<compile_context>
chip_gen: v7x
topology: tpu7x:2x2x1
jax: 0.10.0
libtpu: 0.0.40
codegen_flags: <defaults>
</compile_context>

<pallas_src>
import functools

import numpy as np
import jax
import jax.numpy as jnp
from jax import lax
from jax.experimental import pallas as pl
from jax.experimental.pallas import tpu as pltpu

EPS = 1e-5      # nn.BatchNorm3d default eps
LANE = 128
TARGET_ROWS = 1024   # aim for >=1024 output rows per grid step

_VMEM_LIMIT_CACHE = None


def _vmem_limit_bytes():
    """Generation-aware VMEM limit (v5e/v6e: 128 MiB, v7x: 64 MiB per TC)."""
    global _VMEM_LIMIT_CACHE
    if _VMEM_LIMIT_CACHE is None:
        try:
            cap = int(pltpu.get_tpu_info().vmem_capacity_bytes)
        except Exception:
            cap = 64 << 20   # conservative fallback (v7x per-TensorCore VMEM)
        _VMEM_LIMIT_CACHE = min(int(cap * 0.7), 96 << 20)
    return _VMEM_LIMIT_CACHE


def _rup(n, m=LANE):
    return ((n + m - 1) // m) * m


def _pad_last(a, to):
    c = a.shape[-1]
    if c == to:
        return a
    return jnp.pad(a, [(0, 0)] * (a.ndim - 1) + [(0, to - c)])


# ----------------------------------------------------------------------------
# Fused kernel:  out = [relu]( concat(tap windows) @ w_stack + bias
#                              (+ residual) )
# ----------------------------------------------------------------------------
def _fused_conv_kernel(*refs, n_src, taps, out_hw, relu, has_res):
    """refs = (src_0 .. src_{n_src-1}, w, bias, [residual], out).

    Every source is a 4-D (tb, Hs, Ws, K) VMEM block with K % 128 == 0.  Each
    static tap (src, r0, c0) selects the (Ho, Wo) window of that source at
    row/col offset (r0, c0).  All tap windows (including the optional fused 1x1
    projection source) are concatenated along lanes and fed to the MXU as ONE
    (tb*Ho*Wo, K_total) @ (K_total, CoutP) matmul with an f32 accumulator;
    folded-BN bias, optional residual add and ReLU run on the accumulator
    before a single lane-dense store.
    """
    Ho, Wo = out_hw
    xs = refs[:n_src]
    w_ref = refs[n_src]
    b_ref = refs[n_src + 1]
    pos = n_src + 2
    r_ref = None
    if has_res:
        r_ref = refs[pos]
        pos += 1
    o_ref = refs[pos]
    m = o_ref.shape[0]                           # tb * Ho * Wo

    vals = [None] * n_src
    pieces = []
    for (s, r0, c0) in taps:                     # static tap list
        if vals[s] is None:
            vals[s] = xs[s][...]                 # load each source block once
        v = vals[s][:, r0:r0 + Ho, c0:c0 + Wo, :]
        pieces.append(v.reshape(m, v.shape[-1]))
    lhs = pieces[0] if len(pieces) == 1 else jnp.concatenate(pieces, axis=-1)

    acc = jnp.dot(lhs, w_ref[...], preferred_element_type=jnp.float32)
    acc = acc + b_ref[...]                       # (1, CoutP) broadcast, f32
    if has_res:
        acc = acc + r_ref[...].astype(jnp.float32)   # bf16 residual stream
    if relu:
        acc = jnp.maximum(acc, 0.0)
    o_ref[...] = acc.astype(o_ref.dtype)


# ----------------------------------------------------------------------------
# Tile (images per grid step) picker with honest VMEM accounting
# ----------------------------------------------------------------------------
def _pick_tb(B, bytes_per_image, fixed_bytes, rows, *, budget,
             target_rows=TARGET_ROWS):
    divisors = [d for d in range(1, B + 1) if B % d == 0]
    tb = 1
    for d in divisors:
        if d > 1 and fixed_bytes + d * bytes_per_image > budget:
            break
        tb = d
        if d * rows >= target_rows:
            break
    if tb == B and B > 1:                 # keep >= 2 grid steps (megacore)
        tb = max(d for d in divisors if d < B)
    if B > 1 and (B // tb) % 2 == 1:      # prefer an even step count (v7x 2 TCs)
        cands = [d for d in divisors if d <= tb and (B // d) % 2 == 0]
        if cands:
            tb = max(cands)
    return tb


# ----------------------------------------------------------------------------
# conv1: (kt,1,1) temporal conv + folded BN + ReLU, tiled over (clip, frame)
# ----------------------------------------------------------------------------
def _temporal_conv(x_cl_p, w1, bias, *, kt, cinner_p):
    """x_cl_p: (N, T, H, W, Cin_p) bf16 channels-last (Cin_p % 128 == 0)."""
    N, T, H, W, cin_p = x_cl_p.shape
    cin, cinner = w1.shape[1], w1.shape[2]
    pt = kt // 2
    hw = H * W

    xt = x_cl_p.reshape(N, T, hw, cin_p)
    xt = jnp.pad(xt, ((0, 0), (pt, pt), (0, 0), (0, 0)))   # (N, T+2pt, hw, Cp)

    w_p = _pad_last(w1, cinner_p)                            # (kt, cin, CinnerP)
    w_p = jnp.pad(w_p, ((0, 0), (0, cin_p - cin), (0, 0)))
    w_stack = w_p.reshape(kt * cin_p, cinner_p).astype(jnp.bfloat16)
    b_p = _pad_last(bias.reshape(1, cinner), cinner_p).astype(jnp.float32)

    taps = tuple((dt, 0, 0) for dt in range(kt))
    in_specs, args = [], []
    for dt in range(kt):
        in_specs.append(pl.BlockSpec((1, 1, hw, cin_p),
                                     lambda n, t, dt=dt: (n, t + dt, 0, 0)))
        args.append(xt)
    in_specs.append(pl.BlockSpec(w_stack.shape, lambda n, t: (0, 0)))
    args.append(w_stack)
    in_specs.append(pl.BlockSpec((1, cinner_p), lambda n, t: (0, 0)))
    args.append(b_p)

    kernel = functools.partial(_fused_conv_kernel, n_src=kt, taps=taps,
                               out_hw=(1, hw), relu=True, has_res=False)
    out = pl.pallas_call(
        kernel,
        out_shape=jax.ShapeDtypeStruct((N * T * hw, cinner_p), jnp.bfloat16),
        grid=(N, T),
        in_specs=in_specs,
        out_specs=pl.BlockSpec((hw, cinner_p), lambda n, t: (n * T + t, 0)),
        compiler_params=pltpu.CompilerParams(
            dimension_semantics=("parallel", "parallel"),
            vmem_limit_bytes=_vmem_limit_bytes()),
    )(*args)
    return out.reshape(N * T, H, W, cinner_p)


# ----------------------------------------------------------------------------
# conv2 / conv3: (1,3,3) conv + folded BN (+ fused shortcut) + ReLU
# ----------------------------------------------------------------------------
def _spatial_conv(f, w, bias, *, stride, cout_p, out_dtype, relu=True,
                  residual=None, proj=None):
    """f: (B, H, W, Cin_p) bf16 channels-last activation (Cin_p % 128 == 0).
    w: (3, 3, Cin, Cout) f32 weights with BN scale folded.
    bias: (Cout,) f32 folded bias.
    residual: optional (B, H, W, CoutP) bf16 tensor (identity shortcut).
    proj: optional (px (B, Ho, Wo, Cx_p) bf16, pw (Cx, Cout) f32): fused 1x1
          projection shortcut whose weight rows are appended to the stacked
          conv weight so the whole step remains a single MXU matmul.
    Returns a (B*Ho*Wo, CoutP) array (rows ordered image-major).
    """
    B, H, W, cin_p = f.shape
    cin, cout = w.shape[2], w.shape[3]
    Ho = (H - 1) // stride + 1
    Wo = (W - 1) // stride + 1
    rows = Ho * Wo

    # Halo pad once; all 9 taps are resolved in-kernel (no im2col through HBM).
    xp = jnp.pad(f, ((0, 0), (1, 1), (1, 1), (0, 0)))        # (B, H+2, W+2, Cp)
    used = sorted({(dh % stride, dw % stride)
                   for dh in range(3) for dw in range(3)})
    srcs = [xp[:, a::stride, b::stride, :] for (a, b) in used]
    key_idx = {k: i for i, k in enumerate(used)}
    taps = [(key_idx[(dh % stride, dw % stride)], dh // stride, dw // stride)
            for dh in range(3) for dw in range(3)]           # (dh, dw) major

    # Stack the 9 tap weights (BN scale already folded) into one RHS.
    w_p = _pad_last(w, cout_p)                                # (3,3,cin,CoutP)
    w_p = jnp.pad(w_p, ((0, 0), (0, 0), (0, cin_p - cin), (0, 0)))
    w_stack = w_p.reshape(9 * cin_p, cout_p)
    b_p = _pad_last(bias.reshape(1, cout), cout_p).astype(jnp.float32)

    if proj is not None:
        px, pw = proj                       # px (B, Ho, Wo, Cx_p) bf16
        cx = pw.shape[0]
        cx_p = px.shape[-1]
        pw_p = _pad_last(pw, cout_p)
        pw_p = jnp.pad(pw_p, ((0, cx_p - cx), (0, 0)))
        w_stack = jnp.concatenate([w_stack, pw_p], axis=0)
        srcs = srcs + [px]
        taps = taps + [(len(srcs) - 1, 0, 0)]

    w_stack = w_stack.astype(jnp.bfloat16)
    ktot = w_stack.shape[0]

    # VMEM accounting: double-buffered inputs/outputs/weights + in-kernel
    # im2col LHS and f32 accumulator scratch.
    out_isize = np.dtype(out_dtype).itemsize
    bytes_per_image = 0
    for s_ in srcs:
        bytes_per_image += int(np.prod(s_.shape[1:])) * 2 * 2
    bytes_per_image += rows * cout_p * out_isize * 2
    if residual is not None:
        bytes_per_image += rows * cout_p * 2 * 2
    bytes_per_image += rows * ktot * 2          # im2col LHS scratch (bf16)
    bytes_per_image += rows * cout_p * 4        # f32 accumulator scratch
    fixed_bytes = ktot * cout_p * 2 * 2 + cout_p * 4 * 2
    tb = _pick_tb(B, bytes_per_image, fixed_bytes, rows,
                  budget=_vmem_limit_bytes() // 2)

    in_specs = [pl.BlockSpec((tb,) + tuple(s_.shape[1:]),
                             lambda i: (i, 0, 0, 0)) for s_ in srcs]
    args = [s_.astype(jnp.bfloat16) for s_ in srcs]
    in_specs.append(pl.BlockSpec(w_stack.shape, lambda i: (0, 0)))
    args.append(w_stack)
    in_specs.append(pl.BlockSpec((1, cout_p), lambda i: (0, 0)))
    args.append(b_p)

    has_res = residual is not None
    if has_res:
        res2 = residual.reshape(B * rows, cout_p).astype(jnp.bfloat16)
        in_specs.append(pl.BlockSpec((tb * rows, cout_p), lambda i: (i, 0)))
        args.append(res2)

    kernel = functools.partial(_fused_conv_kernel, n_src=len(srcs),
                               taps=tuple(taps), out_hw=(Ho, Wo),
                               relu=relu, has_res=has_res)
    return pl.pallas_call(
        kernel,
        out_shape=jax.ShapeDtypeStruct((B * rows, cout_p), out_dtype),
        grid=(B // tb,),
        in_specs=in_specs,
        out_specs=pl.BlockSpec((tb * rows, cout_p), lambda i: (i, 0)),
        compiler_params=pltpu.CompilerParams(
            dimension_semantics=("parallel",),
            vmem_limit_bytes=_vmem_limit_bytes()),
    )(*args)


# ----------------------------------------------------------------------------
# Parameters (deterministic init) and BN folding
# ----------------------------------------------------------------------------
def init_params(key, dim_in, dim_inner, dim_out, temp_kernel_size, stride):
    has_temp = temp_kernel_size > 1
    has_proj = (dim_in != dim_out) or (stride > 1)
    keys = iter(jax.random.split(key, 32))
    p = {}

    def bn(c):
        g = jax.random.uniform(next(keys), (c,), minval=0.5, maxval=1.5, dtype=jnp.float32)
        b = 0.1 * jax.random.normal(next(keys), (c,), dtype=jnp.float32)
        m = 0.1 * jax.random.normal(next(keys), (c,), dtype=jnp.float32)
        v = jax.random.uniform(next(keys), (c,), minval=0.5, maxval=1.5, dtype=jnp.float32)
        return (g, b, m, v)

    if has_temp:
        p['w1'] = 0.1 * jax.random.normal(next(keys), (temp_kernel_size, dim_in, dim_inner), dtype=jnp.float32)
        p['bn1'] = bn(dim_inner)
    c2_in = dim_inner if has_temp else dim_in
    p['w2'] = 0.1 * jax.random.normal(next(keys), (3, 3, c2_in, dim_inner), dtype=jnp.float32)
    p['bn2'] = bn(dim_inner)
    p['w3'] = 0.1 * jax.random.normal(next(keys), (3, 3, dim_inner, dim_out), dtype=jnp.float32)
    p['b3'] = 0.1 * jax.random.normal(next(keys), (dim_out,), dtype=jnp.float32)  # conv3 has bias=True
    p['bn3'] = bn(dim_out)
    if has_proj:
        p['w0'] = 0.1 * jax.random.normal(next(keys), (dim_in, dim_out), dtype=jnp.float32)
        p['bn0'] = bn(dim_out)
    return p


def _fold_bn(bn, conv_bias=None):
    g, b, m, v = bn
    scale = g / jnp.sqrt(v + EPS)
    bias = b - m * scale
    if conv_bias is not None:
        bias = bias + conv_bias * scale
    return scale, bias


# ----------------------------------------------------------------------------
# Res18Block forward (Pallas)
# ----------------------------------------------------------------------------
def res18_block_pallas(x, params, *, dim_in, dim_inner, dim_out,
                       temp_kernel_size, stride):
    """x: (N, C, T, H, W) float32 (PyTorch NCDHW).  Returns NCDHW output."""
    has_temp = temp_kernel_size > 1
    has_proj = (dim_in != dim_out) or (stride > 1)
    if has_temp:
        assert temp_kernel_size % 2 == 1, "odd temporal kernel expected"
    N, C, T, H, W = x.shape
    assert C == dim_in

    cin_p = _rup(dim_in)
    cinner_p = _rup(dim_inner)
    cout_p = _rup(dim_out)

    xc = jnp.transpose(x, (0, 2, 3, 4, 1))                  # (N, T, H, W, C)
    xc_p = _pad_last(xc, cin_p).astype(jnp.bfloat16)        # lane-dense bf16
    B = N * T

    # ---- conv1: (kt,1,1) temporal conv + BN + ReLU -------------------------
    if has_temp:
        s1, b1 = _fold_bn(params['bn1'])
        w1 = params['w1'] * s1[None, None, :]
        f = _temporal_conv(xc_p, w1, b1, kt=temp_kernel_size, cinner_p=cinner_p)
    else:
        f = xc_p.reshape(B, H, W, cin_p)

    # ---- conv2: (1,3,3) stride 1, pad 1 + BN + ReLU ------------------------
    s2, b2 = _fold_bn(params['bn2'])
    w2 = params['w2'] * s2[None, None, None, :]
    g = _spatial_conv(f, w2, b2, stride=1, cout_p=cinner_p,
                      out_dtype=jnp.bfloat16)
    g = g.reshape(B, H, W, cinner_p)

    # ---- conv3: (1,3,3) stride s, pad 1 + bias + BN, fused shortcut, ReLU --
    Ho = (H - 1) // stride + 1
    Wo = (W - 1) // stride + 1
    s3, b3 = _fold_bn(params['bn3'], conv_bias=params['b3'])
    w3 = params['w3'] * s3[None, None, None, :]

    if has_proj:
        s0, b0 = _fold_bn(params['bn0'])
        pw = params['w0'] * s0[None, :]                      # bn0 scale folded
        px = xc_p.reshape(B, H, W, cin_p)[:, ::stride, ::stride, :]
        out2d = _spatial_conv(g, w3, b3 + b0, stride=stride, cout_p=cout_p,
                              out_dtype=jnp.float32, proj=(px, pw))
    else:
        # identity shortcut (stride == 1 and dim_in == dim_out => cin_p == cout_p)
        res = xc_p.reshape(B, H, W, cout_p)
        out2d = _spatial_conv(g, w3, b3, stride=stride, cout_p=cout_p,
                              out_dtype=jnp.float32, residual=res)

    out = out2d.reshape(N, T, Ho, Wo, cout_p)[..., :dim_out]
    return jnp.transpose(out, (0, 4, 1, 2, 3))               # back to NCDHW


# ----------------------------------------------------------------------------
# Pure-JAX reference (lax.conv_general_dilated) for correctness check
# ----------------------------------------------------------------------------
def res18_block_reference(x, params, *, dim_in, dim_inner, dim_out,
                          temp_kernel_size, stride):
    has_temp = temp_kernel_size > 1
    has_proj = (dim_in != dim_out) or (stride > 1)
    dn = ('NCDHW', 'OIDHW', 'NCDHW')

    def bn_apply(y, bn):
        g, b, m, v = bn
        sh = (1, -1, 1, 1, 1)
        return (y - m.reshape(sh)) / jnp.sqrt(v.reshape(sh) + EPS) * g.reshape(sh) + b.reshape(sh)

    f = x
    if has_temp:
        w = jnp.transpose(params['w1'], (2, 1, 0))[:, :, :, None, None]
        pt = temp_kernel_size // 2
        f = lax.conv_general_dilated(f, w, (1, 1, 1), [(pt, pt), (0, 0), (0, 0)],
                                     dimension_numbers=dn, precision=lax.Precision.HIGHEST)
        f = jax.nn.relu(bn_apply(f, params['bn1']))

    w = jnp.transpose(params['w2'], (3, 2, 0, 1))[:, :, None, :, :]
    f = lax.conv_general_dilated(f, w, (1, 1, 1), [(0, 0), (1, 1), (1, 1)],
                                 dimension_numbers=dn, precision=lax.Precision.HIGHEST)
    f = jax.nn.relu(bn_apply(f, params['bn2']))

    w = jnp.transpose(params['w3'], (3, 2, 0, 1))[:, :, None, :, :]
    f = lax.conv_general_dilated(f, w, (1, stride, stride), [(0, 0), (1, 1), (1, 1)],
                                 dimension_numbers=dn, precision=lax.Precision.HIGHEST)
    f = f + params['b3'].reshape(1, -1, 1, 1, 1)
    f = bn_apply(f, params['bn3'])

    if has_proj:
        w = jnp.transpose(params['w0'], (1, 0))[:, :, None, None, None]
        sc = lax.conv_general_dilated(x, w, (1, stride, stride), [(0, 0), (0, 0), (0, 0)],
                                      dimension_numbers=dn, precision=lax.Precision.HIGHEST)
        sc = bn_apply(sc, params['bn0'])
    else:
        sc = x
    return jax.nn.relu(sc + f)


# ----------------------------------------------------------------------------
if __name__ == "__main__":
    key = jax.random.PRNGKey(0)

    configs = [
        # projection shortcut + temporal conv + spatial stride 2
        dict(dim_in=8, dim_inner=8, dim_out=16, temp_kernel_size=3, stride=2,
             N=2, T=4, H=16, W=16),
        # identity shortcut, no temporal conv, stride 1
        dict(dim_in=16, dim_inner=16, dim_out=16, temp_kernel_size=1, stride=1,
             N=2, T=4, H=16, W=16),
    ]

    for cfg in configs:
        key, kx, kp = jax.random.split(key, 3)
        N, T, H, W = cfg['N'], cfg['T'], cfg['H'], cfg['W']
        x = 0.5 * jax.random.normal(kx, (N, cfg['dim_in'], T, H, W), dtype=jnp.float32)
        params = init_params(kp, cfg['dim_in'], cfg['dim_inner'], cfg['dim_out'],
                             cfg['temp_kernel_size'], cfg['stride'])

        block_kwargs = dict(dim_in=cfg['dim_in'], dim_inner=cfg['dim_inner'],
                            dim_out=cfg['dim_out'],
                            temp_kernel_size=cfg['temp_kernel_size'],
                            stride=cfg['stride'])

        out = res18_block_pallas(x, params, **block_kwargs)
        out = jax.block_until_ready(out)

        ref = res18_block_reference(x, params, **block_kwargs)
        ref = jax.block_until_ready(ref)

        Ho = (H - 1) // cfg['stride'] + 1
        Wo = (W - 1) // cfg['stride'] + 1
        expect_shape = (N, cfg['dim_out'], T, Ho, Wo)
        assert out.shape == expect_shape, (out.shape, expect_shape)
        err = float(np.max(np.abs(np.asarray(out) - np.asarray(ref))))
        if not np.allclose(np.asarray(out), np.asarray(ref), rtol=2e-2, atol=2e-2):
            raise AssertionError(
                f"Pallas output mismatch vs reference (cfg={cfg}), max abs err = {err}")

    print("KERNEL_OK")
</pallas_src>

<mosaic_0001>
module attributes {stable_mosaic.version = 11 : i64} {
  func.func @_fused_conv_kernel(%arg0: i32, %arg1: i32, %arg2: memref<1x1x256x128xbf16, #tpu.memory_space<vmem>>, %arg3: memref<1x1x256x128xbf16, #tpu.memory_space<vmem>>, %arg4: memref<1x1x256x128xbf16, #tpu.memory_space<vmem>>, %arg5: memref<384x128xbf16, #tpu.memory_space<vmem>>, %arg6: memref<1x128xf32, #tpu.memory_space<vmem>>, %arg7: memref<256x128xbf16, #tpu.memory_space<vmem>>) attributes {dimension_semantics = [#tpu.dimension_semantics<parallel>, #tpu.dimension_semantics<parallel>], iteration_bounds = array<i64: 2, 4>, scalar_prefetch = 0 : i64, scratch_operands = 0 : i64, tpu.core_type = #tpu.core_type<tc>, window_params = [{transform_indices = @transform_0, window_bounds = array<i64: 1, 1, 256, 128>}, {transform_indices = @transform_1, window_bounds = array<i64: 1, 1, 256, 128>}, {transform_indices = @transform_2, window_bounds = array<i64: 1, 1, 256, 128>}, {pipeline_mode = #tpu.pipeline_mode<synchronous>, transform_indices = @transform_3, window_bounds = array<i64: 384, 128>}, {pipeline_mode = #tpu.pipeline_mode<synchronous>, transform_indices = @transform_4, window_bounds = array<i64: 1, 128>}, {transform_indices = @transform_5, window_bounds = array<i64: 256, 128>}]} {
    %c0 = arith.constant 0 : index
    %c0_0 = arith.constant 0 : index
    %c0_1 = arith.constant 0 : index
    %c0_2 = arith.constant 0 : index
    %0 = vector.load %arg2[%c0, %c0_0, %c0_1, %c0_2] : memref<1x1x256x128xbf16, #tpu.memory_space<vmem>>, vector<1x1x256x128xbf16>
    %1 = vector.shape_cast %0 : vector<1x1x256x128xbf16> to vector<256x128xbf16>
    %c0_3 = arith.constant 0 : index
    %c0_4 = arith.constant 0 : index
    %c0_5 = arith.constant 0 : index
    %c0_6 = arith.constant 0 : index
    %2 = vector.load %arg3[%c0_3, %c0_4, %c0_5, %c0_6] : memref<1x1x256x128xbf16, #tpu.memory_space<vmem>>, vector<1x1x256x128xbf16>
    %3 = vector.shape_cast %2 : vector<1x1x256x128xbf16> to vector<256x128xbf16>
    %c0_7 = arith.constant 0 : index
    %c0_8 = arith.constant 0 : index
    %c0_9 = arith.constant 0 : index
    %c0_10 = arith.constant 0 : index
    %4 = vector.load %arg4[%c0_7, %c0_8, %c0_9, %c0_10] : memref<1x1x256x128xbf16, #tpu.memory_space<vmem>>, vector<1x1x256x128xbf16>
    %5 = vector.shape_cast %4 : vector<1x1x256x128xbf16> to vector<256x128xbf16>
    %6 = tpu.concatenate %1, %3, %5 in 1 : vector<256x128xbf16>, vector<256x128xbf16>, vector<256x128xbf16> -> vector<256x384xbf16>
    %c0_11 = arith.constant 0 : index
    %c0_12 = arith.constant 0 : index
    %7 = vector.load %arg5[%c0_11, %c0_12] : memref<384x128xbf16, #tpu.memory_space<vmem>>, vector<384x128xbf16>
    %cst = arith.constant dense<0.000000e+00> : vector<256x128xf32>
    %8 = tpu.matmul %6, %7, %cst {dimension_numbers = #tpu.dot_dimension_numbers<[1], [0], [0], [1], [0, 0, 1, 1], [], []>} : vector<256x384xbf16>, vector<384x128xbf16>, vector<256x128xf32> -> vector<256x128xf32>
    %c0_13 = arith.constant 0 : index
    %c0_14 = arith.constant 0 : index
    %9 = vector.load %arg6[%c0_13, %c0_14] : memref<1x128xf32, #tpu.memory_space<vmem>>, vector<1x128xf32>
    %10 = vector.broadcast %9 : vector<1x128xf32> to vector<256x128xf32>
    %11 = arith.addf %8, %10 : vector<256x128xf32>
    %cst_15 = arith.constant 0.000000e+00 : f32
    %12 = vector.broadcast %cst_15 : f32 to vector<256x128xf32>
    %13 = arith.maximumf %11, %12 : vector<256x128xf32>
    %14 = arith.truncf %13 : vector<256x128xf32> to vector<256x128xbf16>
    %c0_16 = arith.constant 0 : index
    %c0_17 = arith.constant 0 : index
    %15 = vector.load %arg7[%c0_16, %c0_17] : memref<256x128xbf16, #tpu.memory_space<vmem>>, vector<256x128xbf16>
    tpu.vector_store %arg7[%c0_16, %c0_17], %14 {strides = array<i32>} : memref<256x128xbf16, #tpu.memory_space<vmem>>, vector<256x128xbf16>,
    return
  }
  func.func @transform_0(%arg0: i32, %arg1: i32) -> (i32, i32, i32, i32) {
    %c0_i32 = arith.constant 0 : i32
    %0 = arith.addi %arg1, %c0_i32 : i32
    %c0_i32_0 = arith.constant 0 : i32
    %c0_i32_1 = arith.constant 0 : i32
    %c0_i32_2 = arith.constant 0 : i32
    return %arg0, %0, %c0_i32_0, %c0_i32_1 : i32, i32, i32, i32
  }
  func.func @transform_1(%arg0: i32, %arg1: i32) -> (i32, i32, i32, i32) {
    %c1_i32 = arith.constant 1 : i32
    %0 = arith.addi %arg1, %c1_i32 : i32
    %c0_i32 = arith.constant 0 : i32
    %c0_i32_0 = arith.constant 0 : i32
    %c0_i32_1 = arith.constant 0 : i32
    return %arg0, %0, %c0_i32, %c0_i32_0 : i32, i32, i32, i32
  }
  func.func @transform_2(%arg0: i32, %arg1: i32) -> (i32, i32, i32, i32) {
    %c2_i32 = arith.constant 2 : i32
    %0 = arith.addi %arg1, %c2_i32 : i32
    %c0_i32 = arith.constant 0 : i32
    %c0_i32_0 = arith.constant 0 : i32
    %c0_i32_1 = arith.constant 0 : i32
    return %arg0, %0, %c0_i32, %c0_i32_0 : i32, i32, i32, i32
  }
  func.func @transform_3(%arg0: i32, %arg1: i32) -> (i32, i32) {
    %c0_i32 = arith.constant 0 : i32
    %c0_i32_0 = arith.constant 0 : i32
    %c0_i32_1 = arith.constant 0 : i32
    return %c0_i32, %c0_i32_0 : i32, i32
  }
  func.func @transform_4(%arg0: i32, %arg1: i32) -> (i32, i32) {
    %c0_i32 = arith.constant 0 : i32
    %c0_i32_0 = arith.constant 0 : i32
    %c0_i32_1 = arith.constant 0 : i32
    return %c0_i32, %c0_i32_0 : i32, i32
  }
  func.func @transform_5(%arg0: i32, %arg1: i32) -> (i32, i32) {
    %c4_i32 = arith.constant 4 : i32
    %0 = arith.muli %arg0, %c4_i32 : i32
    %1 = arith.addi %0, %arg1 : i32
    %c0_i32 = arith.constant 0 : i32
    %c0_i32_0 = arith.constant 0 : i32
    return %1, %c0_i32 : i32, i32
  }
}

</mosaic_0001>

<bundles_post_ra>
// kernel: tpu_custom_call.1
= control target key start
LH: loop header
LB: loop body
LE: loop exit
PB: predicated region body
PF: predicated region fallthrough
CT: control target
= control target key end

     0   :  { %s3321_s0 = inlined_call_operand.hbm [shape: bf16[2,6,256,128], index: 0, kind: input, shape index: {}]   ;;  %s3322_s1 = inlined_call_operand.hbm [shape: bf16[2,6,256,128], index: 1, kind: input, shape index: {}]   ;;  %s3323_s2 = inlined_call_operand.hbm [shape: bf16[2,6,256,128], index: 2, kind: input, shape index: {}]   ;;  %s3324_s3 = inlined_call_operand.hbm [shape: bf16[384,128], index: 3, kind: input, shape index: {}]   ;;  %s3325_s4 = inlined_call_operand.vmem [shape: f32[1,128], index: 4, kind: input, shape index: {}]   ;;  %s3326_s5 = inlined_call_operand.hbm [shape: bf16[2048,128], index: 5, kind: output, shape index: {}]  }
   0x1   :  { %3351 = sst [smem:[#allocation32_spill]] %s3321_s0 }
   0x2   :  { %3352 = sst [smem:[#allocation33_spill]] %s3322_s1 }
   0x3   :  { %3353 = sst [smem:[#allocation34_spill]] %s3323_s2 }
   0x4   :  { %3354 = sst [smem:[#allocation35_spill]] %s3324_s3 }
   0x5   :  { %3355 = sst [smem:[#allocation36_spill]] %s3325_s4 }
   0x6   :  { %3356 = sst [smem:[#allocation37_spill]] %s3326_s5 }
   0x7   :  { %10 = vsyncpa [#allocation3], 0 }
   0x8   :  { %12 = vsyncpa [#allocation3 + $0x1], 0 }
   0x9   :  { %13 = vsyncpa [#allocation6], 0 }
   0xa   :  { %15 = vsyncpa [#allocation6 + $0x1], 0 }
   0xb   :  { %16 = vsyncpa [#allocation9], 0 }
   0xc   :  { %17 = vsyncpa [#allocation4], 0 }
   0xd   :  { %19 = vsyncpa [#allocation4 + $0x1], 0  ;;  %s2690_s18 = smov 0   ;;  %s2692_s19 = smov 0  }
   0xe   :  { %s2694_s20 = smov 0   ;;  %s2696_s21 = smov 0  }
   0xf   :  { %s2698_s22 = smov 0   ;;  %s2700_s23 = smov 0  }
  0x10   :  { %s2702_s24 = smov 0   ;;  %s2704_s25 = smov 0  }
  0x11   :  { %s2706_s26 = smov 0   ;;  %s2708_s27 = smov 0  }
  0x12   :  { %s2710_s28 = smov 0   ;;  %s2712_s29 = smov 0  }
  0x13   :  { %s2714_s30 = smov 0   ;;  %s2716_s6 = smov 0  }
  0x14   :  { %s2718_s7 = smov 0   ;;  %s2720_s8 = smov 0  }
  0x15   :  { %s2722_s9 = smov 0  }
  0x16 LB: > { %3357 = sst [smem:[#allocation16_spill]] %s2597_s21  ;;  %s34_s10 = sadd.s32 1, %s2641_s7  ;;  %s2649_s9 = sphi %s2722_s9, %s25_s9   ;;  %s2645_s8 = sphi %s2720_s8, %s3443_s8   ;;  %s2641_s7 = sphi %s2718_s7, %s3431_s7   ;;  %s2637_s6 = sphi %s2716_s6, %s3430_s6   ;;  %s2633_s30 = sphi %s2714_s30, %s3442_s30   ;;  %s2629_s29 = sphi %s2712_s29, %s3428_s29   ;;  %s2625_s28 = sphi %s2710_s28, %s3441_s28   ;;  %s2621_s27 = sphi %s2708_s27, %s3426_s27   ;;  %s2617_s26 = sphi %s2706_s26, %s3425_s26   ;;  %s2613_s25 = sphi %s2704_s25, %s3440_s25   ;;  %s2609_s24 = sphi %s2702_s24, %s3439_s24   ;;  %s2605_s23 = sphi %s2700_s23, %s3438_s23   ;;  %s2601_s22 = sphi %s2698_s22, %s3437_s22   ;;  %s2597_s21 = sphi %s2696_s21, %s3436_s21   ;;  %s2593_s20 = sphi %s2694_s20, %s3435_s20   ;;  %s2589_s19 = sphi %s2692_s19, %s3434_s19   ;;  %s2585_s18 = sphi %s2690_s18, %s3433_s18  }
  0x17   : > { %3358 = sst [smem:[#allocation17_spill]] %s2601_s22  ;;  %s37_s11 = sadd.s32 1, %s2645_s8 }
  0x18   : > { %3359 = sst [smem:[#allocation18_spill]] %s2605_s23  ;;  %p35_p0 = scmp.ge.s32.totalorder %s34_s10, 4 }
  0x19   : > { %3360 = sst [smem:[#allocation19_spill]] %s2617_s26  ;;  %p3336_p1 = scmp.eq.s32.totalorder %s2649_s9, 0 }
  0x1a   : > { %3361 = sst [smem:[#allocation20_spill]] %s2621_s27  ;;  %s76_s12 = sadd.s32 1, %s2617_s26 }
  0x1b   : > { %3362 = sst [smem:[#allocation21_spill]] %s2625_s28  ;;  %p83_p2 = scmp.ne.s32.totalorder %s2617_s26, %s2613_s25 }
  0x1c   : > { %3363 = sst [smem:[#allocation22_spill]] %s2629_s29  ;;  %s3445_s11 = smov (!%p35_p0, %s37_s11), %s2645_s8 }
  0x1d   : > { %3364 = sst [smem:[#allocation23_spill]] %s2633_s30  ;;  %p2787_p3 = por %p83_p2, %p3336_p1 }
  0x1e   : > { %3365 = sst [smem:[#allocation24_spill]] %s2637_s6  ;;  %p39_p4 = scmp.ge.s32.totalorder %s3445_s11, 2 }
  0x1f   : > { %3366 = sst [smem:[#allocation25_spill]] %s2641_s7  ;;  %s99_s17 = sadd.s32 2, %s2641_s7 }
  0x20   : > { %3367 = sst [smem:[#allocation26_spill]] %s2645_s8  ;;  %s3447_s11 = smov (%p39_p4, %s3445_s11), 0 }
  0x21   : > { %s2781_s13 = scalar_select %p35_p0, 0, %s34_s10  }
  0x22   : > { %3370 = sst [smem:[#allocation28_spill]] %s3447_s11  ;;  %s1640_s30 = sshll.u32 %s2645_s8, 2 }
  0x23   : > { %3368 = sst [smem:[#allocation27_spill]] %s2781_s13  ;;  %s70_s14 = sadd.s32 1, %s2781_s13 }
  0x24   : > { %s72_s16 = ssub.s32 %s34_s10, %s70_s14  ;;  %s100_s5 = sadd.s32 2, %s2781_s13 }
  0x25   : > { %s2800_s6 = ssub.s32 %s2645_s8, %s3447_s11  ;;  %s2802_s4 = ssub.s32 %s99_s17, %s100_s5 }
  0x26   : > { %s73_s2 = sor.u32 %s72_s16, %s2800_s6  ;;  %s172_s10 = sadd.s32 %s2641_s7, %s1640_s30 }
  0x27   : > { %p74_p6 = scmp.eq.s32.totalorder %s73_s2, 0  ;;  %s1641_s14 = sshll.u32 %s3447_s11, 2 }
  0x28   : > { %s174_s21 = sadd.s32 %s1641_s14, %s2781_s13  ;;  %p3335_p8 = scmp.lt.s32.totalorder %s2649_s9, 8 }
  0x29   : > { %s2809_s22 = scalar_select %p74_p6, %s2617_s26, %s76_s12  }
  0x2a   : > { %s175_s23 = ssub.s32 %s172_s10, %s174_s21  ;;  %s1646_s27 = sshll.u32 %s2641_s7, 5 }
  0x2b   : > { %3371 = sst [smem:[#allocation29_spill]] %s2809_s22  ;;  %p2811_p7 = scmp.eq.s32.totalorder %s175_s23, 0 }
  0x2c   : > { %s2099_s28 = smul.u32 192, %s2645_s8  ;;  %s254_s29 = sand.u32 1, %s2649_s9  }
  0x2d   : > { %s256_s5 = sand.u32 1, %s2617_s26   ;;  %s3373_s1 = sld [smem:[#allocation33_spill]] }
  0x2e   : > { %s241_s17 = sadd.s32 %s2099_s28, %s1646_s27  ;;  %s1648_s16 = sshll.u32 %s256_s5, 7 }
  0x2f   : > { %s2820_s30 = sshll.u32 %s241_s17, 6  ;;  %s258_s11 = scalar_lea.vmem [#allocation5], %s1648_s16 }
  0x30   : > { %s268_s21 = sshll.u32 %s258_s11, 4  ;;  %p2834_p9 = pnand %p3335_p8, %p2787_p3  ;;  %s2828_s21 = int_to_ptr.vmem [resolvable:$true] %s268_s21 }
  0x31   : > { %s2838_s28 = scalar_lea.sflag [#allocation6], %s254_s29 }
  0x32   : > { %p2349_p11 = pneg %p2834_p9 }
  0x33   : > { %s1534_s14 = scalar_lea.hbm %s3373_s1, %s2820_s30  ;;  %s2352_s15 = scalar_lea.hbm %s3373_s1, 24576 }
  0x34   : > { %s2826_s23 = scalar_lea.hbm %s1534_s14, 2048  ;;  %s2377_s10 = scalar_lea.hbm %s1534_s14, 4096 }
  0x35   : > { %p2348_p10 = scmp.ne.s32.totalorder %s2826_s23, %s2377_s10  ;;  %p2353_p0 = scmp.lt.u32.totalorder %s2826_s23, %s3373_s1 }
  0x36   : > { %p2354_p2 = scmp.lt.u32.totalorder %s2352_s15, %s2377_s10  ;;  %p2356_p4 = scmp.lt.u32.totalorder %s2377_s10, %s2826_s23 }
  0x37   : > { %p2350_p12 = pnand %p2349_p11, %p2348_p10 }
  0x38   : > { %p2355_p3 = por %p2354_p2, %p2353_p0 }
  0x39   : > { %p2351_p13 = pneg %p2350_p12 }
  0x3a   : > { %p2357_p6 = por %p2356_p4, %p2355_p3 }
  0x3c   : > { %p2358_p8 = pnand %p2357_p6, %p2351_p13 }
  0x3e   : > { %2361 = shalt.err (!%p2358_p8)
}
  0x3f   : > { %s2362_s29 = scalar_lea.vmem %s2828_s21, 2048  ;;  %s2651_s2 = smov [#allocation5]  }
  0x40   : > { %p2363_p10 = scmp.ne.s32.totalorder %s2828_s21, %s2362_s29  ;;  %s2367_s12 = sshll.u32 %s2651_s2, 4  ;;  %s2368_s12 = int_to_ptr.vmem [resolvable:$false] %s2367_s12 }
  0x41   : > { %s2369_s14 = scalar_lea.vmem %s2368_s12, 4096  ;;  %p2370_p5 = scmp.lt.s32.totalorder %s2828_s21, %s2368_s12 }
  0x42   : > { %p2365_p12 = pnand %p2363_p10, %p2349_p11  ;;  %p2371_p0 = scmp.lt.s32.totalorder %s2369_s14, %s2362_s29 }
  0x44   : > { %p2366_p1 = pneg %p2365_p12  ;;  %p2372_p2 = por %p2371_p0, %p2370_p5 }
  0x46   : > { %p2373_p3 = pnand %p2372_p2, %p2366_p1 }
  0x48   : > { %2376 = shalt.err (!%p2373_p3)
}
  0x49   : > { %s3337_s10 = smov 64   ;;  %s3339_s11 = smov 4  }
  0x4a   : > { %2122 = dma.hbm_to_vmem [thread:$0]  (!%p2834_p9), %s2826_s23, 2048, %s2828_s21, %s2838_s28, %s3337_s10, %s3337_s10, %s3339_s11  }
  0x4b   : > { %s2869_s5 = sadd.s32 4294967295, %s2649_s9   ;;  %s1639_s15 = sadd.s32 4294967294, %s2649_s9  }
  0x4c   : > { %p3342_p1 = scmp.eq.s32.totalorder %s2869_s5, 0  ;;  %s178_s17 = sadd.s32 1, %s2593_s20 }
  0x4d   : > { %s2877_s16 = scalar_select %p2811_p7, %s2593_s20, %s178_s17  }
  0x4e   : > { %p3376_p5 = scmp.ne.s32.totalorder %s2613_s25, %s2609_s24  ;;  %p188_p9 = scmp.ne.s32.totalorder %s2593_s20, %s2589_s19 }
  0x4f   : > { %3375 = sst [smem:[#allocation30_spill]] %s2877_s16  ;;  %p189_p11 = scmp.eq.s32.totalorder %s2869_s5, 7 }
  0x50   : > { %p2884_p8 = por %p3376_p5, %p3342_p1  ;;  %p194_p13 = scmp.ne.s32.totalorder %s2589_s19, %s2585_s18 }
  0x51   : > { %p195_p4 = scmp.eq.s32.totalorder %s1639_s15, 7  ;;  %p1642_p6 = scmp.ge.s32.totalorder %s2649_s9, 1 }
  0x52   : > { %s3377_s27 = scalar_select %p2884_p8, 1, 0 }
  0x53   : > { %p2894_p10 = por %p189_p11, %p188_p9  ;;  %p202_p12 = scmp.lt.s32.totalorder %s2649_s9, 9 }
  0x54   : > { %p2899_p7 = por %p195_p4, %p194_p13  ;;  %s2654_s23 = smov [#allocation8]  }
  0x55   : > { %s3378_s21 = scalar_select %p2894_p10, 1, 0 }
  0x56   : > { %s3379_s0 = scalar_select %p2899_p7, 1, 0 }
  0x57   : > { %p2903_p0 = pnand %p1642_p6, %p202_p12  ;;  %s214_s29 = sshll.u32 %s2654_s23, 4  ;;  %s215_s29 = int_to_ptr.vmem [resolvable:$true] %s214_s29 }
  0x58   : > { %s42_s12 = ssub.s32 %s2641_s7, %s2781_s13  ;;  %s3382_s3 = sld [smem:[#allocation35_spill]] }
  0x59   : > { %s3380_s24 = scalar_select %p2903_p0, 1, 0 }
  0x5a   : > { %p2112_p2 = pneg %p2903_p0 }
  0x5c   : > { %p2911_p3 = pnand %p2112_p2, %p3342_p1 }
  0x5e   : > { %s2378_s17 = scalar_lea.hbm %s3382_s3, 3072  ;;  %p2380_p9 = pneg %p2911_p3 }
  0x5f   : > { %p2379_p5 = scmp.ne.s32.totalorder %s3382_s3, %s2378_s17  ;;  %p2385_p4 = scmp.lt.u32.totalorder %s2378_s17, %s3382_s3 }
  0x61   : > { %p2381_p11 = pnand %p2380_p9, %p2379_p5 }
  0x63   : > { %p2382_p13 = pneg %p2381_p11 }
  0x65   : > { %p2387_p6 = pnand %p2385_p4, %p2382_p13 }
  0x67   : > { %2390 = shalt.err (!%p2387_p6)
}
  0x68   : > { %s2391_s8 = scalar_lea.vmem %s215_s29, 3072  ;;  %p2399_p7 = scmp.lt.s32.totalorder %s215_s29, %s215_s29 }
  0x69   : > { %p2392_p12 = scmp.ne.s32.totalorder %s215_s29, %s2391_s8  ;;  %p2400_p10 = scmp.lt.s32.totalorder %s2391_s8, %s2391_s8 }
  0x6b   : > { %p2394_p2 = pnand %p2392_p12, %p2380_p9  ;;  %p2401_p8 = por %p2400_p10, %p2399_p7 }
  0x6d   : > { %p2395_p1 = pneg %p2394_p2 }
  0x6f   : > { %p2402_p0 = pnand %p2401_p8, %p2395_p1 }
  0x71   : > { %2405 = shalt.err (!%p2402_p0)
}
  0x72   : > { %s3383_s10 = smov 4   ;;  %s3384_s11 = smov 64  }
  0x73   : > { %s3385_s1 = sld [smem:[#allocation22_spill]]  ;;  %s3386_s17 = sld [smem:[#allocation21_spill]] }
  0x74   : > { %s3387_s23 = sld [smem:[#allocation20_spill]]  ;;  %s43_s8 = sor.u32 %s42_s12, %s2800_s6 }
  0x75   : > { %2115 = dma.hbm_to_vmem [thread:$0]  (!%p2911_p3), %s3382_s3, 3072, %s215_s29, [#allocation9], %s3384_s11, %s3384_s11, %s3383_s10  }
  0x76   : > { %p44_p1 = scmp.eq.s32.totalorder %s43_s8, 0  ;;  %p3389_p7 = scmp.eq.s32.totalorder %s2649_s9, 0 }
  0x77   : > { %p3390_p5 = scmp.eq.s32.totalorder %s2869_s5, 0  ;;  %s3392_s26 = sld [smem:[#allocation32_spill]] }
  0x78   : > { %p3394_p3 = scmp.lt.s32.totalorder %s2649_s9, 8 }
  0x79   : > { %s46_s2 = sadd.s32 1, %s3385_s1  ;;  %p53_p8 = scmp.ne.s32.totalorder %s3385_s1, %s3386_s17 }
  0x7a   : > { %p59_p10 = scmp.ne.s32.totalorder %s3386_s17, %s3387_s23  ;;  %s231_s13 = sand.u32 1, %s3385_s1  }
  0x7b   : > { %s3449_s1 = smov (!%p44_p1, %s3385_s1), %s46_s2  ;;  %p55_p0 = por %p3389_p7, %p53_p8 }
  0x7c   : > { %3388 = sst [smem:[#allocation31_spill]] %s3449_s1  ;;  %p2950_p9 = por %p3390_p5, %p59_p10 }
  0x7d   : > { %s1645_s15 = sshll.u32 %s231_s13, 7  ;;  %s3393_s16 = smov %s3392_s26 }
  0x7e   : > { %s2958_s29 = scalar_lea.hbm %s3392_s26, %s2820_s30  ;;  %s235_s12 = scalar_lea.vmem [#allocation2], %s1645_s15 }
  0x7f   : > { %s244_s17 = sshll.u32 %s235_s12, 4  ;;  %p2962_p11 = pnand %p3394_p3, %p55_p0  ;;  %s2966_s17 = int_to_ptr.vmem [resolvable:$true] %s244_s17 }
  0x80   : > { %s2968_s8 = scalar_lea.sflag [#allocation3], %s231_s13  ;;  %s2406_s22 = scalar_lea.hbm %s2958_s29, 2048 }
  0x81   : > { %p2407_p13 = scmp.ne.s32.totalorder %s2958_s29, %s2406_s22  ;;  %p2408_p4 = pneg %p2962_p11 }
  0x82   : > { %s2411_s2 = scalar_lea.hbm %s3393_s16, 24576  ;;  %p2412_p2 = scmp.lt.u32.totalorder %s2958_s29, %s3393_s16 }
  0x83   : > { %p2409_p6 = pnand %p2408_p4, %p2407_p13  ;;  %p2413_p1 = scmp.lt.u32.totalorder %s2411_s2, %s2406_s22 }
  0x84   : > { %p2415_p10 = scmp.lt.u32.totalorder %s2406_s22, %s2958_s29 }
  0x85   : > { %p2410_p12 = pneg %p2409_p6  ;;  %p2414_p8 = por %p2413_p1, %p2412_p2 }
  0x87   : > { %p2416_p7 = por %p2415_p10, %p2414_p8 }
  0x89   : > { %p2417_p0 = pnand %p2416_p7, %p2410_p12 }
  0x8b   : > { %2420 = shalt.err (!%p2417_p0)
}
  0x8c   : > { %s2421_s13 = scalar_lea.vmem %s2966_s17, 2048  ;;  %s2655_s26 = smov [#allocation2]  }
  0x8d   : > { %p2422_p5 = scmp.ne.s32.totalorder %s2966_s17, %s2421_s13  ;;  %s2426_s7 = sshll.u32 %s2655_s26, 4  ;;  %s2427_s7 = int_to_ptr.vmem [resolvable:$false] %s2426_s7 }
  0x8e   : > { %s2428_s15 = scalar_lea.vmem %s2427_s7, 4096  ;;  %p2429_p6 = scmp.lt.s32.totalorder %s2966_s17, %s2427_s7 }
  0x8f   : > { %p2424_p3 = pnand %p2422_p5, %p2408_p4  ;;  %p2430_p2 = scmp.lt.s32.totalorder %s2428_s15, %s2421_s13 }
  0x91   : > { %p2425_p13 = pneg %p2424_p3  ;;  %p2431_p1 = por %p2430_p2, %p2429_p6 }
  0x93   : > { %p2432_p8 = pnand %p2431_p1, %p2425_p13 }
  0x95   : > { %2435 = shalt.err (!%p2432_p8)
}
  0x96   : > { %s3396_s22 = sld [smem:[#allocation18_spill]]  ;;  %s3397_s2 = sld [smem:[#allocation17_spill]] }
  0x97   : > { %s3398_s12 = sld [smem:[#allocation16_spill]]  ;;  %s103_s23 = sor.u32 %s2802_s4, %s2800_s6 }
  0x98   : > { %2119 = dma.hbm_to_vmem [thread:$0]  (!%p2962_p11), %s2958_s29, 2048, %s2966_s17, %s2968_s8, %s3384_s11, %s3384_s11, %s3383_s10  }
  0x99   : > { %p104_p4 = scmp.eq.s32.totalorder %s103_s23, 0  ;;  %p3399_p7 = scmp.eq.s32.totalorder %s2649_s9, 0 }
  0x9a   : > { %p3400_p5 = scmp.eq.s32.totalorder %s2869_s5, 0  ;;  %s3402_s1 = sld [smem:[#allocation34_spill]] }
  0x9b   : > { %p3403_p11 = scmp.lt.s32.totalorder %s2649_s9, 8 }
  0x9c   : > { %s106_s13 = sadd.s32 1, %s3396_s22  ;;  %p113_p12 = scmp.ne.s32.totalorder %s3396_s22, %s3397_s2 }
  0x9d   : > { %p119_p10 = scmp.ne.s32.totalorder %s3397_s2, %s3398_s12  ;;  %s280_s26 = sand.u32 1, %s3396_s22  }
  0x9e   : > { %s3451_s22 = smov (!%p104_p4, %s3396_s22), %s106_s13  ;;  %p115_p0 = por %p113_p12, %p3399_p7 }
  0x9f   : > { %p3014_p3 = por %p119_p10, %p3400_p5  ;;  %s1651_s15 = sshll.u32 %s280_s26, 7 }
  0xa0   : > { %s1543_s29 = scalar_lea.hbm %s3402_s1, %s2820_s30  ;;  %s282_s6 = scalar_lea.vmem [#allocation7], %s1651_s15 }
  0xa1   : > { %s3401_s7 = scalar_select %p3014_p3, 1, 0 }
  0xa2   : > { %s3022_s4 = scalar_lea.hbm %s1543_s29, 4096  ;;  %s292_s17 = sshll.u32 %s282_s6, 4  ;;  %s3030_s17 = int_to_ptr.vmem [resolvable:$true] %s292_s17 }
  0xa3   : > { %p3026_p13 = pnand %p3403_p11, %p115_p0  ;;  %s2466_s2 = scalar_lea.hbm %s1543_s29, 6144 }
  0xa4   : > { %p2437_p6 = scmp.ne.s32.totalorder %s3022_s4, %s2466_s2  ;;  %s2441_s16 = scalar_lea.hbm %s3402_s1, 24576 }
  0xa5   : > { %p2438_p2 = pneg %p3026_p13  ;;  %p2442_p4 = scmp.lt.u32.totalorder %s3022_s4, %s3402_s1 }
  0xa6   : > { %p2443_p12 = scmp.lt.u32.totalorder %s2441_s16, %s2466_s2  ;;  %p2445_p7 = scmp.lt.u32.totalorder %s2466_s2, %s3022_s4 }
  0xa7   : > { %p2439_p1 = pnand %p2438_p2, %p2437_p6 }
  0xa8   : > { %p2444_p10 = por %p2443_p12, %p2442_p4 }
  0xa9   : > { %p2440_p8 = pneg %p2439_p1 }
  0xaa   : > { %p2446_p0 = por %p2445_p7, %p2444_p10 }
  0xac   : > { %p2447_p5 = pnand %p2446_p0, %p2440_p8 }
  0xae   : > { %2450 = shalt.err (!%p2447_p5)
}
  0xaf   : > { %s2451_s13 = scalar_lea.vmem %s3030_s17, 2048  ;;  %s2656_s26 = smov [#allocation7]  }
  0xb0   : > { %p2452_p11 = scmp.ne.s32.totalorder %s3030_s17, %s2451_s13  ;;  %s2456_s15 = sshll.u32 %s2656_s26, 4  ;;  %s2457_s15 = int_to_ptr.vmem [resolvable:$false] %s2456_s15 }
  0xb1   : > { %s2458_s29 = scalar_lea.vmem %s2457_s15, 4096  ;;  %p2459_p3 = scmp.lt.s32.totalorder %s3030_s17, %s2457_s15 }
  0xb2   : > { %p2454_p6 = pnand %p2452_p11, %p2438_p2  ;;  %p2460_p4 = scmp.lt.s32.totalorder %s2458_s29, %s2451_s13 }
  0xb4   : > { %p2455_p1 = pneg %p2454_p6  ;;  %p2461_p12 = por %p2460_p4, %p2459_p3 }
  0xb6   : > { %p2462_p10 = pnand %p2461_p12, %p2455_p1 }
  0xb8   : > { %2465 = shalt.err (!%p2462_p10)
}
  0xb9   : > { %2125 = dma.hbm_to_vmem [thread:$0]  (!%p3026_p13), %s3022_s4, 2048, %s3030_s17, %s2838_s28, %s3384_s11, %s3384_s11, %s3383_s10  }
  0xba   : > { %p3405_p2 = scmp.ne.s32.totalorder %s3380_s24, 0 }
  0xbb   : > { %s3406_s6 = sld [smem:[#allocation21_spill]] (!%p3405_p2) }
  0xbc   : > { %304 = sbr.rel (%p3405_p2) target bundleno = 576 (0x240), region = 40 }
  0xc1   : > { %s306_s2 = sand.u32 (!%p3405_p2), 1, %s3406_s6  }
  0xc2   : > { %s1655_s3 = sshll.u32 (!%p3405_p2), %s306_s2, 7  ;;  %s307_s30 = scalar_lea.sflag (!%p3405_p2), [#allocation3], %s306_s2 }
  0xc3   : > { %s3063_s16 = scalar_lea.vmem [#allocation2], %s1655_s3 }
  0xc4   : > { %2564 = dma.done.wait (%p2950_p9), %s307_s30, 2048  }
  0xc5   : > { %2566 = vsyncadd (%p2950_p9), %s307_s30, 4294965248  ;;  %s315_s8 = sand.u32 1, %s2869_s5   ;;  %s317_s28 = sand.u32 1, %s2613_s25  }
  0xc6   : > { %s1656_s10 = sshll.u32 %s317_s28, 7  ;;  %s316_s24 = scalar_lea.sflag [#allocation6], %s315_s8 }
  0xc7   : > { %s3071_s11 = scalar_lea.vmem [#allocation5], %s1656_s10  ;;  %p3407_p3 = scmp.ne.s32.totalorder %s3377_s27, 0 }
  0xc9   : > { %2568 = dma.done.wait (%p3407_p3), %s316_s24, 2048  }
  0xca   : > { %2570 = vsyncadd (%p3407_p3), %s316_s24, 4294965248  ;;  %s3408_s4 = sld [smem:[#allocation17_spill]]  ;;  %p3409_p9 = scmp.ne.s32.totalorder %s3401_s7, 0 }
  0xd0   : > { %s326_s17 = sand.u32 1, %s3408_s4  }
  0xd1   : > { %s1657_s12 = sshll.u32 %s326_s17, 7 }
  0xd2   : > { %s3078_s14 = scalar_lea.vmem [#allocation7], %s1657_s12 }
  0xd3   : > { %2572 = dma.done.wait (%p3409_p9), %s316_s24, 2048  }
  0xd4   : > { %2574 = vsyncadd (%p3409_p9), %s316_s24, 4294965248  ;;  %p3410_p13 = scmp.eq.s32.totalorder %s2869_s5, 0 }
  0xd6   : > { %2576 = dma.done.wait (%p3410_p13), [#allocation9], 3072   ;;  %p3411_p8 = pmov %p3410_p13 }
  0xd7   : > { %v2275_v0 = vld [vmem:[#allocation8 + $0x40] sm:$0xff]   ;;  %v2277_v2 = vld [vmem:[#allocation8 + $0x48] sm:$0xff]   ;;  %v2279_v4 = vld [vmem:[#allocation8 + $0x50] sm:$0xff]   ;;  %s3412_s7 = sld [smem:[#allocation36_spill]]  ;;  %s366_s23 = sand.u32 1, %s2589_s19  }
  0xd8   : > { %2578 = vsyncadd (%p3411_p8), [#allocation9], 4294964224  ;;  %v2276_v1 = vld [vmem:[#allocation8] sm:$0xff]   ;;  %1899 = vmatprep.subr.bf16.mxu0 %v2275_v0  ;;  %2083 = vmatprep.subr.bf16.mxu1 %v2275_v0  ;;  %v2278_v3 = vld [vmem:[#allocation8 + $0x8] sm:$0xff]   ;;  %s1659_s13 = sshll.u32 %s366_s23, 7  ;;  %s3413_s15 = sld [smem:[#allocation24_spill]] }
  0xd9   : > { %1900 = vmatpush3.bf16.msra.mxu0 %v2276_v1  ;;  %2091 = vmatpush3.bf16.msra.mxu1 %v2276_v1  ;;  %v2280_v5 = vld [vmem:[#allocation8 + $0x10] sm:$0xff]   ;;  %v2281_v6 = vld [vmem:[#allocation8 + $0x58] sm:$0xff]   ;;  %v2283_v8 = vld [vmem:[#allocation8 + $0x60] sm:$0xff]   ;;  %s3166_s26 = scalar_lea.vmem [#allocation10], %s1659_s13  ;;  %s3414_s29 = sld [smem:[#allocation23_spill]] }
  0xda   : > { %1901 = vmatprep.subr.bf16.mxu0 %v2277_v2  ;;  %2084 = vmatprep.subr.bf16.mxu1 %v2277_v2  ;;  %v2282_v7 = vld [vmem:[#allocation8 + $0x18] sm:$0xff]   ;;  %v2284_v9 = vld [vmem:[#allocation8 + $0x20] sm:$0xff]   ;;  %v2285_v10 = vld [vmem:[#allocation8 + $0x68] sm:$0xff]   ;;  %s1488_s30 = sshll.u32 %s3166_s26, 4  ;;  %s3415_s28 = sld [smem:[#allocation37_spill]]  ;;  %s3231_s30 = int_to_ptr.vmem [resolvable:$true] %s1488_s30 }
  0xdb   : > { %v2291_v11 = vld [vmem:[%s3071_s11] sm:$0xff]   ;;  %v2286_v13 = vld [vmem:[#allocation8 + $0x28] sm:$0xff]   ;;  %v2287_v14 = vld [vmem:[#allocation8 + $0x70] sm:$0xff]   ;;  %s2467_s4 = scalar_lea.vmem %s3231_s30, 2048  ;;  %p3417_p0 = scmp.ne.s32.totalorder %s3378_s21, 0 }
  0xdc   : > { %v2292_v12 = vld [vmem:[%s3071_s11 + $0x60] sm:$0xff]   ;;  %990 = vmatprep.mubr.bf16.mxu0 %v2291_v11  ;;  %v2288_v15 = vld [vmem:[#allocation8 + $0x30] sm:$0xff]   ;;  %v2289_v16 = vld [vmem:[#allocation8 + $0x78] sm:$0xff]   ;;  %p2468_p7 = scmp.ne.s32.totalorder %s3231_s30, %s2467_s4  ;;  %s2657_s17 = smov [#allocation10]  }
  0xdd   : > { %1902 = vmatpush3.bf16.msra.mxu0 %v2278_v3  ;;  %2092 = vmatpush3.bf16.msra.mxu1 %v2278_v3  ;;  %v2290_v17 = vld [vmem:[#allocation8 + $0x38] sm:$0xff]   ;;  %v2293_v18 = vld [vmem:[%s3063_s16] sm:$0xff]   ;;  %v2296_v21 = vld [vmem:[#allocation8 + $0x88] sm:$0xff]   ;;  %s2471_s12 = sshll.u32 %s2657_s17, 4  ;;  %s2472_s12 = int_to_ptr.vmem [resolvable:$false] %s2471_s12 }
  0xde   : > { %1903 = vmatprep.subr.bf16.mxu0 %v2279_v4  ;;  %2085 = vmatprep.subr.bf16.mxu1 %v2279_v4  ;;  %v2295_v19 = vld [vmem:[#allocation8 + $0x80] sm:$0xff]   ;;  %v2297_v22 = vld [vmem:[%s3071_s11 + $0x8] sm:$0xff]   ;;  %v2301_v25 = vld [vmem:[#allocation8 + $0x90] sm:$0xff]   ;;  %s1766_s6 = sshll.u32 %s3413_s15, 2  ;;  %p2469_p5 = pnand %p2468_p7, %p3417_p0 }
  0xdf   : > { %1086 = vmatprep.mubr.bf16.mxu1 %v2292_v12  ;;  %v2294_v20 = vld [vmem:[%s3063_s16 + $0x60] sm:$0xff]   ;;  %v2298_v23 = vld [vmem:[%s3071_s11 + $0x68] sm:$0xff]   ;;  %v2302_v27 = vld [vmem:[#allocation8 + $0x98] sm:$0xff]   ;;  %s1481_s2 = sadd.s32 %s3414_s29, %s1766_s6  ;;  %p2474_p6 = scmp.lt.s32.totalorder %s3231_s30, %s2472_s12 }
  0xe0   : > { %v2299_v24 = vld [vmem:[%s3063_s16 + $0x8] sm:$0xff]   ;;  %v2303_v28 = vld [vmem:[%s3071_s11 + $0x10] sm:$0xff]   ;;  %v2307_v31 = vld [vmem:[#allocation8 + $0xa0] sm:$0xff]   ;;  %s1803_s3 = sshll.u32 %s1481_s2, 11  ;;  %s3416_s10 = smov %s3415_s28 }
  0xe1   : > { %1904 = vmatpush3.bf16.msra.mxu0 %v2280_v5  ;;  %2093 = vmatpush3.bf16.msra.mxu1 %v2280_v5  ;;  %v2300_v26 = vld [vmem:[%s3063_s16 + $0x68] sm:$0xff]   ;;  %v2304_v29 = vld [vmem:[%s3071_s11 + $0x70] sm:$0xff]   ;;  %v2309_v34 = vld [vmem:[%s3071_s11 + $0x18] sm:$0xff]   ;;  %s3229_s24 = scalar_lea.hbm %s3415_s28, %s1803_s3  ;;  %p2470_p11 = pneg %p2469_p5 }
  0xe2   : > { %1905 = vmatprep.subr.bf16.mxu0 %v2281_v6  ;;  %2086 = vmatprep.subr.bf16.mxu1 %v2281_v6  ;;  %v2305_v30 = vld [vmem:[%s3063_s16 + $0x10] sm:$0xff]   ;;  %v2308_v33 = vld [vmem:[#allocation8 + $0xa8] sm:$0xff]   ;;  %v2310_v35 = vld [vmem:[%s3071_s11 + $0x78] sm:$0xff]  }
  0xe3   : > { %v2306_v32 = vld [vmem:[%s3063_s16 + $0x70] sm:$0xff]   ;;  %v2311_v36 = vld [vmem:[%s3063_s16 + $0x18] sm:$0xff]   ;;  %v2315_v40 = vld [vmem:[%s3071_s11 + $0x20] sm:$0xff]  }
  0xe4   : > { %v2313_v37 = vld [vmem:[#allocation8 + $0xb0] sm:$0xff]   ;;  %v2312_v38 = vld [vmem:[%s3063_s16 + $0x78] sm:$0xff]   ;;  %v2316_v41 = vld [vmem:[%s3078_s14] sm:$0xff]  }
  0xe5   : > { %1906 = vmatpush3.bf16.msra.mxu0 %v2282_v7  ;;  %2094 = vmatpush3.bf16.msra.mxu1 %v2282_v7  ;;  %v2314_v39 = vld [vmem:[#allocation8 + $0xb8] sm:$0xff]   ;;  %v2317_v42 = vld [vmem:[%s3063_s16 + $0x20] sm:$0xff]   ;;  %v2318_v43 = vld [vmem:[%s3078_s14 + $0x8] sm:$0xff]  }
  0xe6   : > { %1907 = vmatprep.subr.bf16.mxu0 %v2283_v8  ;;  %2087 = vmatprep.subr.bf16.mxu1 %v2283_v8  ;;  %v2319_v44 = vld [vmem:[%s3071_s11 + $0x28] sm:$0xff]   ;;  %v2320_v45 = vld [vmem:[%s3078_s14 + $0x10] sm:$0xff]   ;;  %v2322_v47 = vld [vmem:[%s3078_s14 + $0x18] sm:$0xff]  }
  0xe7   : > { %v2321_v46 = vld [vmem:[%s3063_s16 + $0x28] sm:$0xff]   ;;  %v2323_v48 = vld [vmem:[%s3071_s11 + $0x30] sm:$0xff]   ;;  %v2324_v49 = vld [vmem:[%s3078_s14 + $0x20] sm:$0xff]  }
  0xe8   : > { %v2325_v50 = vld [vmem:[%s3063_s16 + $0x30] sm:$0xff]   ;;  %v2326_v51 = vld [vmem:[%s3078_s14 + $0x28] sm:$0xff]   ;;  %v2327_v52 = vld [vmem:[%s3071_s11 + $0x38] sm:$0xff]  }
  0xe9   : > { %1908 = vmatpush3.bf16.msra.mxu0 %v2284_v9  ;;  %2095 = vmatpush3.bf16.msra.mxu1 %v2284_v9  ;;  %v2328_v53 = vld [vmem:[%s3078_s14 + $0x30] sm:$0xff]   ;;  %v2329_v54 = vld [vmem:[%s3063_s16 + $0x38] sm:$0xff]   ;;  %v2331_v56 = vld [vmem:[%s3071_s11 + $0x40] sm:$0xff]  }
  0xea   : > { %1909 = vmatprep.subr.bf16.mxu0 %v2285_v10  ;;  %2088 = vmatprep.subr.bf16.mxu1 %v2285_v10  ;;  %v2330_v55 = vld [vmem:[%s3078_s14 + $0x38] sm:$0xff]   ;;  %v2332_v57 = vld [vmem:[%s3078_s14 + $0x40] sm:$0xff]   ;;  %v2334_v59 = vld [vmem:[%s3078_s14 + $0x48] sm:$0xff]  }
  0xeb   : > { %v2333_v58 = vld [vmem:[%s3063_s16 + $0x40] sm:$0xff]   ;;  %v2335_v60 = vld [vmem:[%s3071_s11 + $0x48] sm:$0xff]   ;;  %v2336_v61 = vld [vmem:[%s3078_s14 + $0x50] sm:$0xff]  }
  0xec   : > { %v2337_v62 = vld [vmem:[%s3063_s16 + $0x48] sm:$0xff]   ;;  %v2338_v63 = vld [vmem:[%s3078_s14 + $0x58] sm:$0xff]   ;;  %v2339_v0 = vld [vmem:[%s3071_s11 + $0x50] sm:$0xff]  }
  0xed   : > { %1910 = vmatpush3.bf16.msra.mxu0 %v2286_v13  ;;  %2096 = vmatpush3.bf16.msra.mxu1 %v2286_v13  ;;  %v2340_v1 = vld [vmem:[%s3078_s14 + $0x60] sm:$0xff]   ;;  %v2341_v2 = vld [vmem:[%s3063_s16 + $0x50] sm:$0xff]   ;;  %v2342_v3 = vld [vmem:[%s3078_s14 + $0x68] sm:$0xff]  }
  0xee   : > { %1911 = vmatprep.subr.bf16.mxu0 %v2287_v14  ;;  %2089 = vmatprep.subr.bf16.mxu1 %v2287_v14  ;;  %v2343_v4 = vld [vmem:[%s3071_s11 + $0x58] sm:$0xff]   ;;  %v2344_v5 = vld [vmem:[%s3078_s14 + $0x70] sm:$0xff]   ;;  %s3236_s11 = scalar_lea.sflag [#allocation4], %s366_s23 }
  0xef   : > { %v2345_v6 = vld [vmem:[%s3063_s16 + $0x58] sm:$0xff]  }
  0xf0   : > { %v2346_v7 = vld [vmem:[%s3078_s14 + $0x78] sm:$0xff]   ;;  %s2473_s14 = scalar_lea.vmem %s2472_s12, 4096 }
  0xf1   : > { %1912 = vmatpush3.bf16.msra.mxu0 %v2288_v15  ;;  %2097 = vmatpush3.bf16.msra.mxu1 %v2288_v15  ;;  %p2475_p1 = scmp.lt.s32.totalorder %s2473_s14, %s2467_s4 }
  0xf2   : > { %1913 = vmatprep.subr.bf16.mxu0 %v2289_v16  ;;  %2090 = vmatprep.subr.bf16.mxu1 %v2289_v16 }
  0xf3   : > { %p2476_p4 = por %p2475_p1, %p2474_p6 }
  0xf5   : > { %1914 = vmatpush3.bf16.msra.mxu0 %v2290_v17  ;;  %2098 = vmatpush3.bf16.msra.mxu1 %v2290_v17  ;;  %p2477_p12 = pnand %p2476_p4, %p2470_p11 }
  0xf6   : > { %2035 = vmatprep.subr.bf16.mxu1 %v2295_v19 }
  0xf8   : > { %991 = vmatmul.mubr.bf16.vlgmr.msra.gmra.mrb[0].mxu0 %v2293_v18  ;;  %1087 = vmatmul.mubr.bf16.vlgmr.msra.gmra.mrb[0].mxu1 %v2294_v20 }
  0xf9   : > { %2036 = vmatpush3.bf16.msra.mxu1 %v2295_v19  ;;  %998 = vmatprep.mubr.bf16.mxu0 %v2297_v22 }
  0xfa   : > { %2037 = vmatprep.subr.bf16.mxu1 %v2296_v21  ;;  %1094 = vmatprep.mubr.bf16.mxu1 %v2298_v23 }
  0xfd   : > { %2038 = vmatpush3.bf16.msra.mxu1 %v2296_v21 }
  0xfe   : > { %2039 = vmatprep.subr.bf16.mxu1 %v2301_v25 }
 0x100   : > { %999 = vmatmul.mubr.bf16.gmra.mrb[4].mxu0 %v2299_v24  ;;  %1095 = vmatmul.mubr.bf16.gmra.mrb[4].mxu1 %v2300_v26 }
 0x101   : > { %2040 = vmatpush3.bf16.msra.mxu1 %v2301_v25  ;;  %1006 = vmatprep.mubr.bf16.mxu0 %v2303_v28 }
 0x102   : > { %2041 = vmatprep.subr.bf16.mxu1 %v2302_v27  ;;  %1102 = vmatprep.mubr.bf16.mxu1 %v2304_v29 }
 0x105   : > { %2042 = vmatpush3.bf16.msra.mxu1 %v2302_v27 }
 0x106   : > { %2043 = vmatprep.subr.bf16.mxu1 %v2307_v31 }
 0x108   : > { %1007 = vmatmul.mubr.bf16.gmra.mrb[8].mxu0 %v2305_v30  ;;  %1103 = vmatmul.mubr.bf16.gmra.mrb[8].mxu1 %v2306_v32 }
 0x109   : > { %2044 = vmatpush3.bf16.msra.mxu1 %v2307_v31  ;;  %1014 = vmatprep.mubr.bf16.mxu0 %v2309_v34 }
 0x10a   : > { %2045 = vmatprep.subr.bf16.mxu1 %v2308_v33  ;;  %1110 = vmatprep.mubr.bf16.mxu1 %v2310_v35 }
 0x10d   : > { %2046 = vmatpush3.bf16.msra.mxu1 %v2308_v33 }
 0x10e   : > { %2047 = vmatprep.subr.bf16.mxu1 %v2313_v37 }
 0x110   : > { %1015 = vmatmul.mubr.bf16.gmra.mrb[12].mxu0 %v2311_v36  ;;  %1111 = vmatmul.mubr.bf16.gmra.mrb[12].mxu1 %v2312_v38 }
 0x111   : > { %2048 = vmatpush3.bf16.msra.mxu1 %v2313_v37  ;;  %1022 = vmatprep.mubr.bf16.mxu0 %v2315_v40 }
 0x112   : > { %2049 = vmatprep.subr.bf16.mxu1 %v2314_v39  ;;  %2051 = vmatprep.mubr.bf16.mxu1 %v2316_v41 }
 0x115   : > { %2050 = vmatpush3.bf16.msra.mxu1 %v2314_v39 }
 0x118   : > { %1023 = vmatmul.mubr.bf16.gmra.mrb[16].mxu0 %v2317_v42  ;;  %2052 = vmatmul.mubr.bf16.vlgmr.msra.gmra.mrb[16].mxu1 %v2318_v43 }
 0x119   : > { %1030 = vmatprep.mubr.bf16.mxu0 %v2319_v44  ;;  %2055 = vmatprep.mubr.bf16.mxu1 %v2320_v45 }
 0x120   : > { %1031 = vmatmul.mubr.bf16.gmra.mrb[20].mxu0 %v2321_v46  ;;  %2056 = vmatmul.mubr.bf16.gmra.mrb[20].mxu1 %v2322_v47 }
 0x121   : > { %1038 = vmatprep.mubr.bf16.mxu0 %v2323_v48  ;;  %2059 = vmatprep.mubr.bf16.mxu1 %v2324_v49 }
 0x128   : > { %1039 = vmatmul.mubr.bf16.gmra.mrb[24].mxu0 %v2325_v50  ;;  %2060 = vmatmul.mubr.bf16.gmra.mrb[24].mxu1 %v2326_v51 }
 0x129   : > { %1046 = vmatprep.mubr.bf16.mxu0 %v2327_v52  ;;  %2063 = vmatprep.mubr.bf16.mxu1 %v2328_v53 }
 0x130   : > { %1047 = vmatmul.mubr.bf16.gmra.mrb[28].mxu0 %v2329_v54  ;;  %2064 = vmatmul.mubr.bf16.gmra.mrb[28].mxu1 %v2330_v55 }
 0x131   : > { %1054 = vmatprep.mubr.bf16.mxu0 %v2331_v56  ;;  %2067 = vmatprep.mubr.bf16.mxu1 %v2332_v57  ;;  %v3155_v56 = vld [vmem:[%s3412_s7] ss:$0 sm:$0xff] }
 0x138   : > { %1055 = vmatmul.mubr.bf16.gmra.mrb[32].mxu0 %v2333_v58  ;;  %2068 = vmatmul.mubr.bf16.gmra.mrb[32].mxu1 %v2334_v59 }
 0x139   : > { %1062 = vmatprep.mubr.bf16.mxu0 %v2335_v60  ;;  %2071 = vmatprep.mubr.bf16.mxu1 %v2336_v61 }
 0x140   : > { %1063 = vmatmul.mubr.bf16.gmra.mrb[36].mxu0 %v2337_v62  ;;  %2072 = vmatmul.mubr.bf16.gmra.mrb[36].mxu1 %v2338_v63 }
 0x141   : > { %1070 = vmatprep.mubr.bf16.mxu0 %v2339_v0  ;;  %2075 = vmatprep.mubr.bf16.mxu1 %v2340_v1 }
 0x148   : > { %1071 = vmatmul.mubr.bf16.gmra.mrb[40].mxu0 %v2341_v2  ;;  %2076 = vmatmul.mubr.bf16.gmra.mrb[40].mxu1 %v2342_v3 }
 0x149   : > { %1078 = vmatprep.mubr.bf16.mxu0 %v2343_v4  ;;  %2079 = vmatprep.mubr.bf16.mxu1 %v2344_v5 }
 0x150   : > { %1079 = vmatmul.mubr.bf16.gmra.mrb[44].mxu0 %v2345_v6  ;;  %2080 = vmatmul.mubr.bf16.gmra.mrb[44].mxu1 %v2346_v7 }
 0x1cb   : > { %v1915_v8 = vpop.f32.mrb[0].mxu0  ;;  %v1987_v9 = vpop.f32.mrb[0].mxu1 }
 0x1cc   : > { %v1916_v10 = vpop.f32.mrb[1].mxu0  ;;  %v1988_v11 = vpop.f32.mrb[1].mxu1 }
 0x1cd   : > { %v1917_v12 = vadd.f32 %v1916_v10, %v1915_v8  ;;  %v1918_v13 = vpop.f32.mrb[2].mxu0  ;;  %v3136_v14 = vadd.f32 %v1988_v11, %v1987_v9  ;;  %v1990_v15 = vpop.f32.mrb[2].mxu1 }
 0x1ce   : > { %v1919_v16 = vpop.f32.mrb[3].mxu0  ;;  %v1991_v17 = vpop.f32.mrb[3].mxu1 }
 0x1cf   : > { %v1920_v18 = vadd.f32 %v1919_v16, %v1918_v13  ;;  %v3138_v19 = vadd.f32 %v1991_v17, %v1990_v15  ;;  %v993_v60 = vadd.f32 %v1917_v12, %v3155_v56 }
 0x1d1   : > { %v996_v5 = vadd.f32 %v1920_v18, %v3155_v56 }
 0x1d3   : > { %v1921_v20 = vpop.f32.mrb[4].mxu0  ;;  %v1993_v21 = vpop.f32.mrb[4].mxu1 }
 0x1d4   : > { %v1922_v22 = vpop.f32.mrb[5].mxu0  ;;  %v1994_v23 = vpop.f32.mrb[5].mxu1 }
 0x1d5   : > { %v1923_v24 = vadd.f32 %v1922_v22, %v1921_v20  ;;  %v1924_v25 = vpop.f32.mrb[6].mxu0  ;;  %v3140_v26 = vadd.f32 %v1994_v23, %v1993_v21  ;;  %v1996_v27 = vpop.f32.mrb[6].mxu1 }
 0x1d6   : > { %v1925_v28 = vpop.f32.mrb[7].mxu0  ;;  %v1997_v29 = vpop.f32.mrb[7].mxu1 }
 0x1d7   : > { %v1926_v30 = vadd.f32 %v1925_v28, %v1924_v25  ;;  %v3142_v31 = vadd.f32 %v1997_v29, %v1996_v27  ;;  %v1001_v57 = vadd.f32 %v1923_v24, %v3155_v56 }
 0x1d9   : > { %v1004_v0 = vadd.f32 %v1926_v30, %v3155_v56 }
 0x1db   : > { %v1927_v32 = vpop.f32.mrb[8].mxu0  ;;  %v1999_v33 = vpop.f32.mrb[8].mxu1 }
 0x1dc   : > { %v1928_v34 = vpop.f32.mrb[9].mxu0  ;;  %v2000_v35 = vpop.f32.mrb[9].mxu1 }
 0x1dd   : > { %v1929_v36 = vadd.f32 %v1928_v34, %v1927_v32  ;;  %v1930_v37 = vpop.f32.mrb[10].mxu0  ;;  %v3144_v38 = vadd.f32 %v2000_v35, %v1999_v33  ;;  %v2002_v39 = vpop.f32.mrb[10].mxu1 }
 0x1de   : > { %v1931_v40 = vpop.f32.mrb[11].mxu0  ;;  %v2003_v41 = vpop.f32.mrb[11].mxu1 }
 0x1df   : > { %v1932_v42 = vadd.f32 %v1931_v40, %v1930_v37  ;;  %v3146_v43 = vadd.f32 %v2003_v41, %v2002_v39  ;;  %v1009_v23 = vadd.f32 %v1929_v36, %v3155_v56 }
 0x1e1   : > { %v1012_v33 = vadd.f32 %v1932_v42, %v3155_v56 }
 0x1e3   : > { %v1933_v44 = vpop.f32.mrb[12].mxu0  ;;  %v2005_v45 = vpop.f32.mrb[12].mxu1 }
 0x1e4   : > { %v1934_v46 = vpop.f32.mrb[13].mxu0  ;;  %v2006_v47 = vpop.f32.mrb[13].mxu1 }
 0x1e5   : > { %v1935_v48 = vadd.f32 %v1934_v46, %v1933_v44  ;;  %v1936_v49 = vpop.f32.mrb[14].mxu0  ;;  %v3148_v50 = vadd.f32 %v2006_v47, %v2005_v45  ;;  %v2008_v51 = vpop.f32.mrb[14].mxu1 }
 0x1e6   : > { %v1937_v52 = vpop.f32.mrb[15].mxu0  ;;  %v2009_v53 = vpop.f32.mrb[15].mxu1 }
 0x1e7   : > { %v1938_v54 = vadd.f32 %v1937_v52, %v1936_v49  ;;  %v3150_v55 = vadd.f32 %v2009_v53, %v2008_v51  ;;  %v1017_v17 = vadd.f32 %v1935_v48, %v3155_v56 }
 0x1e9   : > { %v1020_v27 = vadd.f32 %v1938_v54, %v3155_v56 }
 0x1eb   : > { %v1939_v58 = vpop.f32.mrb[16].mxu0  ;;  %v2053_v59 = vpop.f32.mrb[16].mxu1 }
 0x1ec   : > { %v1162_v61 = vadd.f32 %v2053_v59, %v1001_v57  ;;  %v1940_v62 = vpop.f32.mrb[17].mxu0  ;;  %v1153_v63 = vpop.f32.mrb[17].mxu1 }
 0x1ed   : > { %v1941_v1 = vadd.f32 %v1940_v62, %v1939_v58  ;;  %v1154_v2 = vadd.f32 %v1153_v63, %v993_v60  ;;  %v1942_v3 = vpop.f32.mrb[18].mxu0  ;;  %v2054_v4 = vpop.f32.mrb[18].mxu1 }
 0x1ee   : > { %v1165_v6 = vadd.f32 %v2054_v4, %v1004_v0  ;;  %v1943_v7 = vpop.f32.mrb[19].mxu0  ;;  %v1156_v8 = vpop.f32.mrb[19].mxu1  ;;  %v1282_v11 = vmax.f32 %v1162_v61, 0.0 }
 0x1ef   : > { %v1944_v9 = vadd.f32 %v1943_v7, %v1942_v3  ;;  %v1157_v10 = vadd.f32 %v1156_v8, %v996_v5  ;;  %v1280_v13 = vmax.f32 %v1154_v2, 0.0  ;;  %v1025_v52 = vadd.f32 %v1941_v1, %v3155_v56 }
 0x1f0   : > { %v1283_v12 = vmax.f32 %v1165_v6, 0.0 }
 0x1f1   : > { %v1281_v15 = vmax.f32 %v1157_v10, 0.0  ;;  %v1028_v62 = vadd.f32 %v1944_v9, %v3155_v56 }
 0x1f2   : > { %v1812_v16 = vpack.c.bf16 %v1283_v12, %v1282_v11 }
 0x1f3   : > { %v1807_v20 = vpack.c.bf16 %v1281_v15, %v1280_v13  ;;  %v1945_v21 = vpop.f32.mrb[20].mxu0  ;;  %v2057_v22 = vpop.f32.mrb[20].mxu1 }
 0x1f4   : > { %1884 = vst [vmem:[%s3166_s26 + $0x8] sm:$0xff] %v1812_v16   ;;  %v1178_v18 = vadd.f32 %v2057_v22, %v1017_v17  ;;  %v1946_v24 = vpop.f32.mrb[21].mxu0  ;;  %v1169_v25 = vpop.f32.mrb[21].mxu1 }
 0x1f5   : > { %1808 = vst [vmem:[%s3166_s26] sm:$0xff] %v1807_v20   ;;  %v1947_v28 = vadd.f32 %v1946_v24, %v1945_v21  ;;  %v1170_v29 = vadd.f32 %v1169_v25, %v1009_v23  ;;  %v1948_v30 = vpop.f32.mrb[22].mxu0  ;;  %v2058_v32 = vpop.f32.mrb[22].mxu1 }
 0x1f6   : > { %v1181_v34 = vadd.f32 %v2058_v32, %v1020_v27  ;;  %v1949_v35 = vpop.f32.mrb[23].mxu0  ;;  %v1172_v36 = vpop.f32.mrb[23].mxu1  ;;  %v1286_v40 = vmax.f32 %v1178_v18, 0.0 }
 0x1f7   : > { %v1950_v37 = vadd.f32 %v1949_v35, %v1948_v30  ;;  %v1173_v39 = vadd.f32 %v1172_v36, %v1012_v33  ;;  %v1284_v44 = vmax.f32 %v1170_v29, 0.0  ;;  %v1033_v47 = vadd.f32 %v1947_v28, %v3155_v56 }
 0x1f8   : > { %v1287_v41 = vmax.f32 %v1181_v34, 0.0 }
 0x1f9   : > { %v1285_v45 = vmax.f32 %v1173_v39, 0.0  ;;  %v1036_v57 = vadd.f32 %v1950_v37, %v3155_v56 }
 0x1fa   : > { %v1822_v46 = vpack.c.bf16 %v1287_v41, %v1286_v40 }
 0x1fb   : > { %v1817_v48 = vpack.c.bf16 %v1285_v45, %v1284_v44  ;;  %v1951_v49 = vpop.f32.mrb[24].mxu0  ;;  %v2061_v51 = vpop.f32.mrb[24].mxu1 }
 0x1fc   : > { %1886 = vst [vmem:[%s3166_s26 + $0x18] sm:$0xff] %v1822_v46   ;;  %v1194_v42 = vadd.f32 %v2061_v51, %v1033_v47  ;;  %v1952_v53 = vpop.f32.mrb[25].mxu0  ;;  %v1185_v54 = vpop.f32.mrb[25].mxu1 }
 0x1fd   : > { %1885 = vst [vmem:[%s3166_s26 + $0x10] sm:$0xff] %v1817_v48   ;;  %v1953_v58 = vadd.f32 %v1952_v53, %v1951_v49  ;;  %v1186_v59 = vadd.f32 %v1185_v54, %v1025_v52  ;;  %v1954_v60 = vpop.f32.mrb[26].mxu0  ;;  %v2062_v61 = vpop.f32.mrb[26].mxu1 }
 0x1fe   : > { %v1197_v63 = vadd.f32 %v2062_v61, %v1036_v57  ;;  %v1955_v0 = vpop.f32.mrb[27].mxu0  ;;  %v1188_v2 = vpop.f32.mrb[27].mxu1  ;;  %v1290_v4 = vmax.f32 %v1194_v42, 0.0 }
 0x1ff   : > { %v1956_v3 = vadd.f32 %v1955_v0, %v1954_v60  ;;  %v1189_v1 = vadd.f32 %v1188_v2, %v1028_v62  ;;  %v1288_v6 = vmax.f32 %v1186_v59, 0.0  ;;  %v1041_v13 = vadd.f32 %v1953_v58, %v3155_v56 }
 0x200   : > { %v1291_v5 = vmax.f32 %v1197_v63, 0.0 }
 0x201   : > { %v1289_v7 = vmax.f32 %v1189_v1, 0.0  ;;  %v1044_v22 = vadd.f32 %v1956_v3, %v3155_v56 }
 0x202   : > { %v1832_v8 = vpack.c.bf16 %v1291_v5, %v1290_v4 }
 0x203   : > { %v1827_v10 = vpack.c.bf16 %v1289_v7, %v1288_v6  ;;  %v1957_v11 = vpop.f32.mrb[28].mxu0  ;;  %v2065_v12 = vpop.f32.mrb[28].mxu1 }
 0x204   : > { %1888 = vst [vmem:[%s3166_s26 + $0x28] sm:$0xff] %v1832_v8   ;;  %v1958_v15 = vpop.f32.mrb[29].mxu0  ;;  %v1201_v16 = vpop.f32.mrb[29].mxu1 }
 0x205   : > { %1887 = vst [vmem:[%s3166_s26 + $0x20] sm:$0xff] %v1827_v10   ;;  %v1959_v9 = vadd.f32 %v1958_v15, %v1957_v11  ;;  %v1202_v17 = vadd.f32 %v1201_v16, %v1041_v13  ;;  %v1960_v20 = vpop.f32.mrb[30].mxu0  ;;  %v2066_v21 = vpop.f32.mrb[30].mxu1  ;;  %v1097_v10 = vadd.f32 %v3140_v26, %v3155_v56  ;;  %v1089_v15 = vadd.f32 %v3136_v14, %v3155_v56 }
 0x206   : > { %v1961_v23 = vpop.f32.mrb[31].mxu0  ;;  %v1204_v18 = vpop.f32.mrb[31].mxu1 }
 0x207   : > { %v1049_v24 = vadd.f32 %v1959_v9, %v3155_v56  ;;  %v1962_v25 = vadd.f32 %v1961_v23, %v1960_v20  ;;  %v1205_v27 = vadd.f32 %v1204_v18, %v1044_v22  ;;  %v1292_v29 = vmax.f32 %v1202_v17, 0.0 }
 0x208   : > { %v1100_v20 = vadd.f32 %v3142_v31, %v3155_v56 }
 0x209   : > { %v1210_v28 = vadd.f32 %v2065_v12, %v1049_v24  ;;  %v1052_v30 = vadd.f32 %v1962_v25, %v3155_v56  ;;  %v1293_v32 = vmax.f32 %v1205_v27, 0.0 }
 0x20b   : > { %v1213_v33 = vadd.f32 %v2066_v21, %v1052_v30  ;;  %v1837_v34 = vpack.c.bf16 %v1293_v32, %v1292_v29  ;;  %v1963_v35 = vpop.f32.mrb[32].mxu0  ;;  %v2069_v36 = vpop.f32.mrb[32].mxu1  ;;  %v1294_v40 = vmax.f32 %v1210_v28, 0.0  ;;  %v1092_v28 = vadd.f32 %v3138_v19, %v3155_v56 }
 0x20c   : > { %v1964_v37 = vpop.f32.mrb[33].mxu0  ;;  %v1217_v39 = vpop.f32.mrb[33].mxu1 }
 0x20d   : > { %v1295_v41 = vmax.f32 %v1213_v33, 0.0  ;;  %1889 = vst [vmem:[%s3166_s26 + $0x30] sm:$0xff] %v1837_v34   ;;  %v1965_v44 = vadd.f32 %v1964_v37, %v1963_v35  ;;  %v1966_v45 = vpop.f32.mrb[34].mxu0  ;;  %v2070_v46 = vpop.f32.mrb[34].mxu1 }
 0x20e   : > { %v1967_v47 = vpop.f32.mrb[35].mxu0  ;;  %v1220_v48 = vpop.f32.mrb[35].mxu1 }
 0x20f   : > { %v1842_v49 = vpack.c.bf16 %v1295_v41, %v1294_v40  ;;  %v1057_v51 = vadd.f32 %v1965_v44, %v3155_v56  ;;  %v1968_v52 = vadd.f32 %v1967_v47, %v1966_v45  ;;  %v1113_v41 = vadd.f32 %v3148_v50, %v3155_v56 }
 0x211   : > { %1890 = vst [vmem:[%s3166_s26 + $0x38] sm:$0xff] %v1842_v49   ;;  %v1218_v42 = vadd.f32 %v1217_v39, %v1057_v51  ;;  %v1060_v53 = vadd.f32 %v1968_v52, %v3155_v56  ;;  %v1116_v52 = vadd.f32 %v3150_v55, %v3155_v56 }
 0x213   : > { %v1221_v54 = vadd.f32 %v1220_v48, %v1060_v53  ;;  %v1969_v57 = vpop.f32.mrb[36].mxu0  ;;  %v3188_v58 = vpop.f32.mrb[36].mxu1  ;;  %v1296_v61 = vmax.f32 %v1218_v42, 0.0 }
 0x214   : > { %v1970_v59 = vpop.f32.mrb[37].mxu0  ;;  %v1233_v60 = vpop.f32.mrb[37].mxu1 }
 0x215   : > { %v1297_v62 = vmax.f32 %v1221_v54, 0.0  ;;  %v1971_v63 = vadd.f32 %v1970_v59, %v1969_v57  ;;  %v1972_v0 = vpop.f32.mrb[38].mxu0  ;;  %v3190_v2 = vpop.f32.mrb[38].mxu1 }
 0x216   : > { %v1973_v3 = vpop.f32.mrb[39].mxu0  ;;  %v1236_v1 = vpop.f32.mrb[39].mxu1 }
 0x217   : > { %v1847_v4 = vpack.c.bf16 %v1297_v62, %v1296_v61  ;;  %v1065_v5 = vadd.f32 %v1971_v63, %v3155_v56  ;;  %v1974_v6 = vadd.f32 %v1973_v3, %v1972_v0  ;;  %v1108_v61 = vadd.f32 %v3146_v43, %v3155_v56 }
 0x219   : > { %1891 = vst [vmem:[%s3166_s26 + $0x40] sm:$0xff] %v1847_v4   ;;  %v1226_v7 = vadd.f32 %v2069_v36, %v1065_v5  ;;  %v1068_v8 = vadd.f32 %v1974_v6, %v3155_v56 }
 0x21b   : > { %v1229_v11 = vadd.f32 %v2070_v46, %v1068_v8  ;;  %v1975_v12 = vpop.f32.mrb[40].mxu0  ;;  %v2077_v13 = vpop.f32.mrb[40].mxu1  ;;  %v1298_v21 = vmax.f32 %v1226_v7, 0.0  ;;  %v1105_v46 = vadd.f32 %v3144_v38, %v3155_v56 }
 0x21c   : > { %v1258_v16 = vadd.f32 %v2077_v13, %v1097_v10  ;;  %v1976_v9 = vpop.f32.mrb[41].mxu0  ;;  %v1249_v17 = vpop.f32.mrb[41].mxu1 }
 0x21d   : > { %v1299_v22 = vmax.f32 %v1229_v11, 0.0  ;;  %v1977_v23 = vadd.f32 %v1976_v9, %v1975_v12  ;;  %v1250_v18 = vadd.f32 %v1249_v17, %v1089_v15  ;;  %v1978_v24 = vpop.f32.mrb[42].mxu0  ;;  %v2078_v25 = vpop.f32.mrb[42].mxu1 }
 0x21e   : > { %v1261_v26 = vadd.f32 %v2078_v25, %v1100_v20  ;;  %v1979_v27 = vpop.f32.mrb[43].mxu0  ;;  %v1252_v29 = vpop.f32.mrb[43].mxu1  ;;  %v1306_v33 = vmax.f32 %v1258_v16, 0.0 }
 0x21f   : > { %v1852_v14 = vpack.c.bf16 %v1299_v22, %v1298_v21  ;;  %v1073_v30 = vadd.f32 %v1977_v23, %v3155_v56  ;;  %v1980_v32 = vadd.f32 %v1979_v27, %v1978_v24  ;;  %v1253_v34 = vadd.f32 %v1252_v29, %v1092_v28 }
 0x220   : > { %v1307_v31 = vmax.f32 %v1261_v26, 0.0  ;;  %v1304_v37 = vmax.f32 %v1250_v18, 0.0 }
 0x221   : > { %1892 = vst [vmem:[%s3166_s26 + $0x48] sm:$0xff] %v1852_v14   ;;  %v1234_v35 = vadd.f32 %v1233_v60, %v1073_v30  ;;  %v1076_v36 = vadd.f32 %v1980_v32, %v3155_v56  ;;  %v1305_v40 = vmax.f32 %v1253_v34, 0.0 }
 0x222   : > { %v1872_v39 = vpack.c.bf16 %v1307_v31, %v1306_v33 }
 0x223   : > { %v1237_v19 = vadd.f32 %v1236_v1, %v1076_v36  ;;  %v1981_v44 = vpop.f32.mrb[44].mxu0  ;;  %v2081_v45 = vpop.f32.mrb[44].mxu1  ;;  %v1867_v47 = vpack.c.bf16 %v1305_v40, %v1304_v37  ;;  %v1300_v42 = vmax.f32 %v1234_v35, 0.0 }
 0x224   : > { %1896 = vst [vmem:[%s3166_s26 + $0x68] sm:$0xff] %v1872_v39   ;;  %v1274_v48 = vadd.f32 %v2081_v45, %v1113_v41  ;;  %v1982_v49 = vpop.f32.mrb[45].mxu0  ;;  %v1265_v51 = vpop.f32.mrb[45].mxu1 }
 0x225   : > { %v1301_v53 = vmax.f32 %v1237_v19, 0.0  ;;  %v1983_v54 = vadd.f32 %v1982_v49, %v1981_v44  ;;  %v1266_v50 = vadd.f32 %v1265_v51, %v1105_v46  ;;  %v1984_v57 = vpop.f32.mrb[46].mxu0  ;;  %v2082_v59 = vpop.f32.mrb[46].mxu1  ;;  %1895 = vst [vmem:[%s3166_s26 + $0x60] sm:$0xff] %v1867_v47  }
 0x226   : > { %v1277_v60 = vadd.f32 %v2082_v59, %v1116_v52  ;;  %v1985_v38 = vpop.f32.mrb[47].mxu0  ;;  %v1268_v62 = vpop.f32.mrb[47].mxu1  ;;  %v1310_v3 = vmax.f32 %v1274_v48, 0.0 }
 0x227   : > { %v1857_v63 = vpack.c.bf16 %v1301_v53, %v1300_v42  ;;  %v1081_v55 = vadd.f32 %v1983_v54, %v3155_v56  ;;  %v1986_v0 = vadd.f32 %v1985_v38, %v1984_v57  ;;  %v1269_v4 = vadd.f32 %v1268_v62, %v1108_v61 }
 0x228   : > { %v1311_v1 = vmax.f32 %v1277_v60, 0.0  ;;  %v1308_v43 = vmax.f32 %v1266_v50, 0.0 }
 0x229   : > { %1893 = vst [vmem:[%s3166_s26 + $0x50] sm:$0xff] %v1857_v63   ;;  %v1242_v5 = vadd.f32 %v3188_v58, %v1081_v55  ;;  %v1084_v6 = vadd.f32 %v1986_v0, %v3155_v56  ;;  %v1309_v8 = vmax.f32 %v1269_v4, 0.0 }
 0x22a   : > { %v1882_v7 = vpack.c.bf16 %v1311_v1, %v1310_v3 }
 0x22b   : > { %v1245_v10 = vadd.f32 %v3190_v2, %v1084_v6  ;;  %v1877_v11 = vpack.c.bf16 %v1309_v8, %v1308_v43  ;;  %v1302_v12 = vmax.f32 %v1242_v5, 0.0 }
 0x22c   : > { %1898 = vst [vmem:[%s3166_s26 + $0x78] sm:$0xff] %v1882_v7  }
 0x22d   : > { %v1303_v13 = vmax.f32 %v1245_v10, 0.0  ;;  %1897 = vst [vmem:[%s3166_s26 + $0x70] sm:$0xff] %v1877_v11  }
 0x22f   : > { %v1862_v56 = vpack.c.bf16 %v1303_v13, %v1302_v12 }
 0x231   : > { %1894 = vst [vmem:[%s3166_s26 + $0x58] sm:$0xff] %v1862_v56  }
 0x232   : > { %2480 = shalt.err (!%p2477_p12)
}
 0x233   : > { %s2481_s5 = scalar_lea.hbm %s3229_s24, 2048  ;;  %s2485_s23 = scalar_lea.hbm %s3416_s10, 16384 }
 0x234   : > { %p2482_p10 = scmp.ne.s32.totalorder %s3229_s24, %s2481_s5  ;;  %p2486_p9 = scmp.lt.u32.totalorder %s3229_s24, %s3416_s10 }
 0x235   : > { %p2487_p13 = scmp.lt.u32.totalorder %s2485_s23, %s2481_s5  ;;  %p2489_p7 = scmp.lt.u32.totalorder %s2481_s5, %s3229_s24 }
 0x236   : > { %p2483_p2 = pnand %p2482_p10, %p3417_p0 }
 0x237   : > { %p2488_p8 = por %p2487_p13, %p2486_p9 }
 0x238   : > { %p2484_p3 = pneg %p2483_p2 }
 0x239   : > { %p2490_p5 = por %p2489_p7, %p2488_p8 }
 0x23b   : > { %p2491_p11 = pnand %p2490_p5, %p2484_p3 }
 0x23d   : > { %2494 = shalt.err (!%p2491_p11)
}
 0x23e   : > { %s2658_s15 = smov 64   ;;  %s2659_s29 = smov 4  }
 0x23f   : > { %2110 = dma.vmem_to_hbm [thread:$0]  (%p3417_p0), %s3231_s30, 2048, %s3229_s24, %s3236_s11, %s2658_s15, %s2658_s15, %s2659_s29  }
 0x240 PF: > { %p2133_p6 = scmp.ge.s32.totalorder %s2649_s9, 2  ;;  %s1503_s6 = sand.u32 1, %s2585_s18  }
 0x241   : > { %p3418_p1 = scmp.ne.s32.totalorder %s3379_s0, 0  ;;  %s1504_s2 = scalar_lea.sflag [#allocation4], %s1503_s6 }
 0x243   : > { %p2127_p4 = pnand %p2133_p6, %p3418_p1 }
 0x245   : > { %2580 = dma.done.wait (!%p2127_p4), %s1504_s2, 2048  }
 0x246   : > { %2582 = vsyncadd (!%p2127_p4), %s1504_s2, 4294965248  ;;  %s25_s9 = sadd.s32 1, %s2649_s9   ;;  %s3420_s21 = sld [smem:[#allocation30_spill]] }
 0x247   : > { %p3265_p12 = scmp.ge.s32.totalorder %s25_s9, 10   ;;  %s3421_s30 = sld [smem:[#allocation17_spill]] }
 0x248   : > { %s3422_s16 = sld [smem:[#allocation18_spill]]  ;;  %s3423_s8 = smov %s3451_s22 }
 0x249   : > { %s3424_s28 = sld [smem:[#allocation19_spill]]  ;;  %s3425_s26 = sld [smem:[#allocation29_spill]] }
 0x24a   : > { %s3426_s27 = sld [smem:[#allocation21_spill]]  ;;  %s3427_s0 = sld [smem:[#allocation22_spill]] }
 0x24b   : > { %s3428_s29 = sld [smem:[#allocation31_spill]]  ;;  %s3429_s11 = sld [smem:[#allocation25_spill]] }
 0x24c   : > { %s3430_s6 = sld [smem:[#allocation26_spill]]  ;;  %s3431_s7 = sld [smem:[#allocation27_spill]] }
 0x24d   : > { %s3432_s4 = sld [smem:[#allocation28_spill]]  ;;  %s3433_s18 = smov %s2589_s19 }
 0x24e   : > { %s3434_s19 = smov %s2593_s20  ;;  %s3435_s20 = smov %s3420_s21 }
 0x24f   : > { %s3436_s21 = smov %s3421_s30  ;;  %s3437_s22 = smov %s3422_s16 }
 0x250   : > { %s3438_s23 = smov %s3423_s8  ;;  %s3439_s24 = smov %s2613_s25 }
 0x251   : > { %s3440_s25 = smov %s3424_s28  ;;  %s3441_s28 = smov %s3427_s0 }
 0x252   : > { %s3442_s30 = smov %s3429_s11  ;;  %24 = sbr.rel (!%p3265_p12) target bundleno = 22 (0x16), region = 113 }
 0x253   : > { %s3443_s8 = smov %s3432_s4 }
 0x259   :  { %1509 = vsyncpa [#allocation3], 1 }
 0x25a   :  { %1511 = vsyncpa [#allocation3 + $0x1], 1 }
 0x25b   :  { %1512 = vsyncpa [#allocation6], 1 }
 0x25c   :  { %1514 = vsyncpa [#allocation6 + $0x1], 1 }
 0x25d   :  { %1515 = vsyncpa [#allocation9], 1 }
 0x25e   :  { %1516 = vsyncpa [#allocation4], 1 }
 0x25f   :  { %1518 = vsyncpa [#allocation4 + $0x1], 1 }

</bundles_post_ra>
